<compile_context>
chip_gen: v6e
topology: v6e:2x2x1
jax: 0.10.0
libtpu: 0.0.40
codegen_flags: <defaults>
</compile_context>

<pallas_src>
import functools

import jax
import jax.numpy as jnp
import numpy as np
from jax.experimental import pallas as pl
from jax.experimental.pallas import tpu as pltpu

LANE = 128


def _round_up(v, m):
    return ((v + m - 1) // m) * m


def gated_rgcn_kernel(x_full_ref, x_tile_ref, src_ref, dst_ref, et_ref,
                      wf_ref, bg_ref, out_ref, *, mxu_dtype):
    """One node-tile of the GatedRGCN forward.

    x_full_ref: (Np, Dp)            f32  all node features (gather source), zero padded
    x_tile_ref: (TN, Dp)            f32  this grid step's node rows
    src_ref:    (Ep, 1)             i32  edge sources      (sentinel = Np for padded edges)
    dst_ref:    (1, Ep)             i32  edge targets      (sentinel = Np)
    et_ref:     (Ep, 1)             i32  edge relation     (sentinel = R)
    wf_ref:     ((R+1)*Dp, Dp+128)  f32  fused [root;W_0..W_{R-1}] weights + gate column
    bg_ref:     (1, Dp+128)         f32  [rgcn bias | bias@wau + b_att | 0]
    out_ref:    (TN, Dp)            f32  gated output h1 for this node tile
    """
    i = pl.program_id(0)
    npad = x_full_ref.shape[0]
    epad = src_ref.shape[0]
    dp = x_full_ref.shape[1]
    tn = out_ref.shape[0]
    n_rel = wf_ref.shape[0] // dp - 1

    def mdot(a, b):
        # MXU matmul. Operands are cast to `mxu_dtype` only at the dot boundary (v5e has no
        # bf16 VPU/EUP, so every compare / mask / elementwise op stays f32); accumulation is f32.
        return jnp.dot(a.astype(mxu_dtype), b.astype(mxu_dtype),
                       preferred_element_type=jnp.float32)

    x_full = x_full_ref[...]                                         # (Np, Dp)
    x_tile = x_tile_ref[...]                                         # (TN, Dp)

    # --- gather: gathered[e, :] = x[src[e], :] via a one-hot (Ep, Np) operator on the MXU.
    src_oh = (jax.lax.broadcasted_iota(jnp.int32, (epad, npad), 1)
              == src_ref[...]).astype(jnp.float32)                   # (Ep, Np)
    gathered = mdot(src_oh, x_full)                                  # (Ep, Dp) exact (0/1 select)

    # --- relation mask already in the wide (Ep, R*Dp) lane-block order: block r is
    #     (et[e] == r) broadcast over Dp lanes. Built with compares only (no int division).
    lane = jax.lax.broadcasted_iota(jnp.int32, (epad, n_rel * dp), 1)
    lo = et_ref[...] * dp                                            # (Ep, 1)
    rel_mask = ((lane >= lo) & (lane < lo + dp)).astype(jnp.float32) # (Ep, R*Dp)
    gathered_wide = jnp.concatenate([gathered] * n_rel, axis=1) * rel_mask   # (Ep, R*Dp)

    # --- combined per-relation scatter-sum AND in-degrees: two MXU matmuls, no per-relation
    #     (N,E) masks and no XLU axis reductions.
    node_ids = i * tn + jax.lax.broadcasted_iota(jnp.int32, (tn, epad), 0)
    dst_scatter = (node_ids == dst_ref[...]).astype(jnp.float32)     # (TN, Ep)
    agg_wide = mdot(dst_scatter, gathered_wide)                      # (TN, R*Dp) scatter-sum
    deg_wide = mdot(dst_scatter, rel_mask)                           # (TN, R*Dp) degrees (exact:
                                                                     #   0/1 operands, f32 accumulate)
    # One reciprocal pass for all relations (approx=False keeps the 1e-4 f32 tolerance).
    inv_deg = pl.reciprocal(jnp.maximum(deg_wide, 1.0), approx=False)
    mean_wide = agg_wide * inv_deg                                   # scatter-mean (0 if no in-edges)

    # --- fused weight matmul, K = (R+1)*Dp; output columns = [u0 | gate logit | 0-pad].
    feat_wide = jnp.concatenate([x_tile, mean_wide], axis=1)         # (TN, (R+1)*Dp)
    big = mdot(feat_wide, wf_ref[...]) + bg_ref[...]                 # (TN, Dp + 128)

    u0 = big[:, :dp]                                                 # includes the RGCN bias
    a1 = jax.nn.sigmoid(big[:, dp:dp + 1])                           # (TN, 1) gate (EUP)
    out_ref[...] = jnp.tanh(u0) * a1 + x_tile * (1.0 - a1)           # lane-dense store


def gated_rgcn_forward(node_features, edge_index, edge_type,
                       rel_weight, root_weight, rgcn_bias, att_weight, att_bias,
                       *, mxu_dtype=jnp.float32, node_tile=128, contract_align=LANE):
    """node_features (N, D) f32, edge_index (2, E) int, edge_type (E,) int,
    rel_weight (R, D, D), root_weight (D, D), rgcn_bias (D,),
    att_weight (1, 2D) [PyTorch Linear layout], att_bias (1,). Returns (N, D) f32.

    mxu_dtype=jnp.bfloat16 casts only the matmul operands (f32 accumulate) — ~4x MXU rate on
    v6e/v7x, supported on v5e; expect ~1e-2 agreement instead of 1e-4.
    contract_align: pad N/E to this multiple (128; use 256 to fully fill v6e/v7x's MXU depth).
    """
    N, D = node_features.shape
    R = rel_weight.shape[0]
    E = edge_index.shape[1]

    Dp = _round_up(D, LANE)
    Np = _round_up(N, contract_align)
    Ep = _round_up(E, contract_align)
    tn = min(node_tile, Np)
    assert Np % tn == 0, "node_tile must divide the padded node count"
    n_tiles = Np // tn
    outw = Dp + LANE                       # u0 lanes + one lane tile carrying the fused gate logit

    f32 = jnp.float32
    x_pad = jnp.zeros((Np, Dp), f32).at[:N, :D].set(node_features.astype(f32))

    # Padded edges get out-of-range sentinels so their one-hot rows/columns are all-zero.
    src = jnp.full((Ep, 1), Np, jnp.int32).at[:E, 0].set(edge_index[0].astype(jnp.int32))
    dst = jnp.full((1, Ep), Np, jnp.int32).at[0, :E].set(edge_index[1].astype(jnp.int32))
    et = jnp.full((Ep, 1), R, jnp.int32).at[:E, 0].set(edge_type.astype(jnp.int32))

    # Fused weight: rows = [x-block ; W_0-block ; ... ; W_{R-1}-block]; columns = [u0 | gate | 0].
    # Gate folding:  logit = x@(root@wau + wax) + sum_r mean_r@(W_r@wau) + (bias@wau + b_att)
    root_f = root_weight.astype(f32)
    rel_f = rel_weight.astype(f32)
    bias_f = rgcn_bias.astype(f32)
    wau = att_weight[:, :D].astype(f32).T          # (D, 1) acts on u0
    wax = att_weight[:, D:].astype(f32).T          # (D, 1) acts on x
    w_fused = jnp.zeros(((R + 1) * Dp, outw), f32)
    w_fused = w_fused.at[:D, :D].set(root_f)
    w_fused = w_fused.at[:D, Dp].set((root_f @ wau + wax)[:, 0])
    for r in range(R):
        r0 = (r + 1) * Dp
        w_fused = w_fused.at[r0:r0 + D, :D].set(rel_f[r])
        w_fused = w_fused.at[r0:r0 + D, Dp].set((rel_f[r] @ wau)[:, 0])
    bias_gate = jnp.zeros((1, outw), f32)
    bias_gate = bias_gate.at[0, :D].set(bias_f)
    bias_gate = bias_gate.at[0, Dp].set((bias_f @ wau)[0] + att_bias.astype(f32)[0])

    # Advisory cost estimate for XLA's scheduler.
    flops = n_tiles * (2 * Ep * Np * Dp                     # gather (recomputed per node tile)
                       + 2 * 2 * tn * Ep * R * Dp           # combined scatter + degrees
                       + 2 * tn * (R + 1) * Dp * outw       # fused weights + gate
                       + 12 * tn * Dp)                      # masks + blend
    transcendentals = Np * Dp + Np + Np * R * Dp
    bytes_accessed = 4 * (Np * Dp * (1 + n_tiles) + 3 * Ep
                          + (R + 1) * Dp * outw + outw + Np * Dp)

    # Scoped-VMEM limit sized from the actual resident footprint (default 16/32 MiB is the
    # first thing to break once the dense one-hot temporaries grow).
    elt = 4
    blocks = elt * 2 * (Np * Dp + tn * Dp + 3 * Ep + (R + 1) * Dp * outw + outw + tn * Dp)
    temps = elt * (Ep * Np + Ep * Dp + 3 * Ep * R * Dp + tn * Ep
                   + 4 * tn * R * Dp + tn * (R + 1) * Dp + tn * outw)
    if mxu_dtype != jnp.float32:
        temps += temps // 2                                  # bf16 copies of matmul operands
    vmem_limit = int(min(96 * 2**20, max(32 * 2**20, 2 * (blocks + temps))))

    out = pl.pallas_call(
        functools.partial(gated_rgcn_kernel, mxu_dtype=mxu_dtype),
        out_shape=jax.ShapeDtypeStruct((Np, Dp), f32),
        grid=(n_tiles,),
        in_specs=[
            pl.BlockSpec((Np, Dp), lambda i: (0, 0)),               # x, full (gather source)
            pl.BlockSpec((tn, Dp), lambda i: (i, 0)),               # x, this node tile
            pl.BlockSpec((Ep, 1), lambda i: (0, 0)),                # src
            pl.BlockSpec((1, Ep), lambda i: (0, 0)),                # dst
            pl.BlockSpec((Ep, 1), lambda i: (0, 0)),                # edge type
            pl.BlockSpec(((R + 1) * Dp, outw), lambda i: (0, 0)),   # fused weights
            pl.BlockSpec((1, outw), lambda i: (0, 0)),              # bias + gate constant
        ],
        out_specs=pl.BlockSpec((tn, Dp), lambda i: (i, 0)),
        compiler_params=pltpu.CompilerParams(
            dimension_semantics=("parallel",),                      # node tiles independent (v7x 2 TCs)
            vmem_limit_bytes=vmem_limit),
        cost_estimate=pl.CostEstimate(flops=flops, transcendentals=transcendentals,
                                      bytes_accessed=bytes_accessed),
    )(x_pad, x_pad, src, dst, et, w_fused, bias_gate)
    return out[:N, :D]                                              # drop padded nodes/lanes


def _reference_np(x, edge_index, edge_type, W, root, bias, w_att, b_att):
    """Pure numpy (float64) GatedRGCN reference: RGCNConv(mean aggr) + sigmoid gate."""
    x = np.asarray(x, np.float64)
    W = np.asarray(W, np.float64)
    root = np.asarray(root, np.float64)
    bias = np.asarray(bias, np.float64)
    w_att = np.asarray(w_att, np.float64)
    b_att = np.asarray(b_att, np.float64)
    src = np.asarray(edge_index[0])
    dst = np.asarray(edge_index[1])
    et = np.asarray(edge_type)
    N, D = x.shape
    R = W.shape[0]

    u0 = x @ root + bias
    for r in range(R):
        agg = np.zeros((N, D))
        cnt = np.zeros((N,))
        for e in range(src.shape[0]):
            if et[e] == r:
                agg[dst[e]] += x[src[e]]
                cnt[dst[e]] += 1.0
        mean = agg / np.maximum(cnt, 1.0)[:, None]
        u0 = u0 + mean @ W[r]
    logit = np.concatenate([u0, x], axis=1) @ w_att.T + b_att
    a1 = 1.0 / (1.0 + np.exp(-logit))
    return np.tanh(u0) * a1 + x * (1.0 - a1)


if __name__ == "__main__":
    N, D, R, E = 8, 32, 3, 16          # nodes, hidden (= in = out channels), relations, edges

    key = jax.random.PRNGKey(0)
    ks = jax.random.split(key, 9)

    node_features = jax.random.normal(ks[0], (N, D), jnp.float32)
    src = jax.random.randint(ks[1], (E,), 0, N, dtype=jnp.int32)
    dst = jax.random.randint(ks[2], (E,), 0, N, dtype=jnp.int32)
    edge_index = jnp.stack([src, dst], axis=0)
    edge_type = jax.random.randint(ks[3], (E,), 0, R, dtype=jnp.int32)

    glorot = float(np.sqrt(6.0 / (D + D)))
    rel_weight = jax.random.uniform(ks[4], (R, D, D), jnp.float32, -glorot, glorot)
    root_weight = jax.random.uniform(ks[5], (D, D), jnp.float32, -glorot, glorot)
    rgcn_bias = 0.1 * jax.random.normal(ks[6], (D,), jnp.float32)
    # xavier_uniform_ with gain = calculate_gain('sigmoid') = 1.0 on the (1, 2D) Linear
    xav = float(np.sqrt(6.0 / (2 * D + 1)))
    att_weight = jax.random.uniform(ks[7], (1, 2 * D), jnp.float32, -xav, xav)
    att_bias = 0.1 * jax.random.normal(ks[8], (1,), jnp.float32)

    args = (node_features, edge_index, edge_type,
            rel_weight, root_weight, rgcn_bias, att_weight, att_bias)
    ref = _reference_np(*args)

    # f32 path; node_tile=64 so the toy size (Np=128) exercises a 2-step parallel grid.
    fwd_f32 = jax.jit(functools.partial(gated_rgcn_forward, node_tile=64))
    out = jax.block_until_ready(fwd_f32(*args))
    np.testing.assert_allclose(np.asarray(out), ref, rtol=1e-4, atol=1e-4)

    # bf16 MXU-operand path (f32 accumulate; elementwise math stays f32 so it is v5e-safe).
    fwd_bf16 = jax.jit(functools.partial(gated_rgcn_forward, node_tile=64,
                                         mxu_dtype=jnp.bfloat16))
    out_bf16 = jax.block_until_ready(fwd_bf16(*args))
    np.testing.assert_allclose(np.asarray(out_bf16), ref, rtol=1e-1, atol=1e-1)

    print("KERNEL_OK")
</pallas_src>

<mosaic_0001>
module attributes {stable_mosaic.version = 11 : i64} {
  func.func @gated_rgcn_kernel(%arg0: i32, %arg1: memref<128x128xf32, #tpu.memory_space<vmem>>, %arg2: memref<64x128xf32, #tpu.memory_space<vmem>>, %arg3: memref<128x1xi32, #tpu.memory_space<vmem>>, %arg4: memref<1x128xi32, #tpu.memory_space<vmem>>, %arg5: memref<128x1xi32, #tpu.memory_space<vmem>>, %arg6: memref<512x256xf32, #tpu.memory_space<vmem>>, %arg7: memref<1x256xf32, #tpu.memory_space<vmem>>, %arg8: memref<64x128xf32, #tpu.memory_space<vmem>>) attributes {dimension_semantics = [#tpu.dimension_semantics<parallel>], iteration_bounds = array<i64: 2>, scalar_prefetch = 0 : i64, scratch_operands = 0 : i64, tpu.core_type = #tpu.core_type<tc>, window_params = [{pipeline_mode = #tpu.pipeline_mode<synchronous>, transform_indices = @transform_0, window_bounds = array<i64: 128, 128>}, {transform_indices = @transform_1, window_bounds = array<i64: 64, 128>}, {pipeline_mode = #tpu.pipeline_mode<synchronous>, transform_indices = @transform_2, window_bounds = array<i64: 128, 1>}, {pipeline_mode = #tpu.pipeline_mode<synchronous>, transform_indices = @transform_3, window_bounds = array<i64: 1, 128>}, {pipeline_mode = #tpu.pipeline_mode<synchronous>, transform_indices = @transform_4, window_bounds = array<i64: 128, 1>}, {pipeline_mode = #tpu.pipeline_mode<synchronous>, transform_indices = @transform_5, window_bounds = array<i64: 512, 256>}, {pipeline_mode = #tpu.pipeline_mode<synchronous>, transform_indices = @transform_6, window_bounds = array<i64: 1, 256>}, {transform_indices = @transform_7, window_bounds = array<i64: 64, 128>}]} {
    %c0 = arith.constant 0 : index
    %c0_0 = arith.constant 0 : index
    %0 = vector.load %arg1[%c0, %c0_0] : memref<128x128xf32, #tpu.memory_space<vmem>>, vector<128x128xf32>
    %c0_1 = arith.constant 0 : index
    %c0_2 = arith.constant 0 : index
    %1 = vector.load %arg2[%c0_1, %c0_2] : memref<64x128xf32, #tpu.memory_space<vmem>>, vector<64x128xf32>
    %2 = tpu.iota {dimensions = array<i32: 1>} : vector<128x128xi32>
    %c0_3 = arith.constant 0 : index
    %c0_4 = arith.constant 0 : index
    %3 = vector.load %arg3[%c0_3, %c0_4] : memref<128x1xi32, #tpu.memory_space<vmem>>, vector<128x1xi32>
    %4 = vector.broadcast %3 : vector<128x1xi32> to vector<128x128xi32>
    %5 = arith.cmpi eq, %2, %4 : vector<128x128xi32>
    %6 = arith.extui %5 : vector<128x128xi1> to vector<128x128xi32>
    %7 = arith.sitofp %6 : vector<128x128xi32> to vector<128x128xf32>
    %cst = arith.constant dense<0.000000e+00> : vector<128x128xf32>
    %8 = tpu.matmul %7, %0, %cst {dimension_numbers = #tpu.dot_dimension_numbers<[1], [0], [0], [1], [0, 0, 1, 1], [], []>} : vector<128x128xf32>, vector<128x128xf32>, vector<128x128xf32> -> vector<128x128xf32>
    %9 = tpu.iota {dimensions = array<i32: 1>} : vector<128x384xi32>
    %c0_5 = arith.constant 0 : index
    %c0_6 = arith.constant 0 : index
    %10 = vector.load %arg5[%c0_5, %c0_6] : memref<128x1xi32, #tpu.memory_space<vmem>>, vector<128x1xi32>
    %c128_i32 = arith.constant 128 : i32
    %11 = vector.broadcast %c128_i32 : i32 to vector<128x1xi32>
    %12 = arith.muli %10, %11 : vector<128x1xi32>
    %13 = vector.broadcast %12 : vector<128x1xi32> to vector<128x384xi32>
    %14 = arith.cmpi sge, %9, %13 : vector<128x384xi32>
    %c128_i32_7 = arith.constant 128 : i32
    %15 = vector.broadcast %c128_i32_7 : i32 to vector<128x1xi32>
    %16 = arith.addi %12, %15 : vector<128x1xi32>
    %17 = vector.broadcast %16 : vector<128x1xi32> to vector<128x384xi32>
    %18 = arith.cmpi slt, %9, %17 : vector<128x384xi32>
    %19 = arith.andi %14, %18 : vector<128x384xi1>
    %20 = arith.extui %19 : vector<128x384xi1> to vector<128x384xi32>
    %21 = arith.sitofp %20 : vector<128x384xi32> to vector<128x384xf32>
    %22 = tpu.concatenate %8, %8, %8 in 1 : vector<128x128xf32>, vector<128x128xf32>, vector<128x128xf32> -> vector<128x384xf32>
    %23 = arith.mulf %22, %21 : vector<128x384xf32>
    %c64_i32 = arith.constant 64 : i32
    %24 = arith.muli %arg0, %c64_i32 : i32
    %25 = tpu.iota {dimensions = array<i32: 0>} : vector<64x128xi32>
    %26 = vector.broadcast %24 : i32 to vector<64x128xi32>
    %27 = arith.addi %26, %25 : vector<64x128xi32>
    %c0_8 = arith.constant 0 : index
    %c0_9 = arith.constant 0 : index
    %28 = vector.load %arg4[%c0_8, %c0_9] : memref<1x128xi32, #tpu.memory_space<vmem>>, vector<1x128xi32>
    %29 = vector.broadcast %28 : vector<1x128xi32> to vector<64x128xi32>
    %30 = arith.cmpi eq, %27, %29 : vector<64x128xi32>
    %31 = arith.extui %30 : vector<64x128xi1> to vector<64x128xi32>
    %32 = arith.sitofp %31 : vector<64x128xi32> to vector<64x128xf32>
    %cst_10 = arith.constant dense<0.000000e+00> : vector<64x384xf32>
    %33 = tpu.matmul %32, %23, %cst_10 {dimension_numbers = #tpu.dot_dimension_numbers<[1], [0], [0], [1], [0, 0, 1, 1], [], []>} : vector<64x128xf32>, vector<128x384xf32>, vector<64x384xf32> -> vector<64x384xf32>
    %cst_11 = arith.constant dense<0.000000e+00> : vector<64x384xf32>
    %34 = tpu.matmul %32, %21, %cst_11 {dimension_numbers = #tpu.dot_dimension_numbers<[1], [0], [0], [1], [0, 0, 1, 1], [], []>} : vector<64x128xf32>, vector<128x384xf32>, vector<64x384xf32> -> vector<64x384xf32>
    %cst_12 = arith.constant 1.000000e+00 : f32
    %35 = vector.broadcast %cst_12 : f32 to vector<64x384xf32>
    %36 = arith.maximumf %34, %35 : vector<64x384xf32>
    %37 = tpu.reciprocal %36 : vector<64x384xf32> -> vector<64x384xf32>
    %38 = arith.mulf %33, %37 : vector<64x384xf32>
    %39 = tpu.concatenate %1, %38 in 1 : vector<64x128xf32>, vector<64x384xf32> -> vector<64x512xf32>
    %c0_13 = arith.constant 0 : index
    %c0_14 = arith.constant 0 : index
    %40 = vector.load %arg6[%c0_13, %c0_14] : memref<512x256xf32, #tpu.memory_space<vmem>>, vector<512x256xf32>
    %cst_15 = arith.constant dense<0.000000e+00> : vector<64x256xf32>
    %41 = tpu.matmul %39, %40, %cst_15 {dimension_numbers = #tpu.dot_dimension_numbers<[1], [0], [0], [1], [0, 0, 1, 1], [], []>} : vector<64x512xf32>, vector<512x256xf32>, vector<64x256xf32> -> vector<64x256xf32>
    %c0_16 = arith.constant 0 : index
    %c0_17 = arith.constant 0 : index
    %42 = vector.load %arg7[%c0_16, %c0_17] : memref<1x256xf32, #tpu.memory_space<vmem>>, vector<1x256xf32>
    %43 = vector.broadcast %42 : vector<1x256xf32> to vector<64x256xf32>
    %44 = arith.addf %41, %43 : vector<64x256xf32>
    %45 = vector.extract_strided_slice %44 {offsets = [0, 0], sizes = [64, 128], strides = [1, 1]} : vector<64x256xf32> to vector<64x128xf32>
    %46 = vector.extract_strided_slice %44 {offsets = [0, 128], sizes = [64, 1], strides = [1, 1]} : vector<64x256xf32> to vector<64x1xf32>
    %47 = arith.negf %46 : vector<64x1xf32>
    %48 = math.exp %47 : vector<64x1xf32>
    %cst_18 = arith.constant 1.000000e+00 : f32
    %49 = vector.broadcast %cst_18 : f32 to vector<64x1xf32>
    %50 = arith.addf %49, %48 : vector<64x1xf32>
    %51 = arith.divf %49, %50 : vector<64x1xf32>
    %52 = math.tanh %45 : vector<64x128xf32>
    %53 = vector.broadcast %51 : vector<64x1xf32> to vector<64x128xf32>
    %54 = arith.mulf %52, %53 : vector<64x128xf32>
    %cst_19 = arith.constant 1.000000e+00 : f32
    %55 = vector.broadcast %cst_19 : f32 to vector<64x1xf32>
    %56 = arith.subf %55, %51 : vector<64x1xf32>
    %57 = vector.broadcast %56 : vector<64x1xf32> to vector<64x128xf32>
    %58 = arith.mulf %1, %57 : vector<64x128xf32>
    %59 = arith.addf %54, %58 : vector<64x128xf32>
    %c0_20 = arith.constant 0 : index
    %c0_21 = arith.constant 0 : index
    %60 = vector.load %arg8[%c0_20, %c0_21] : memref<64x128xf32, #tpu.memory_space<vmem>>, vector<64x128xf32>
    tpu.vector_store %arg8[%c0_20, %c0_21], %59 {strides = array<i32>} : memref<64x128xf32, #tpu.memory_space<vmem>>, vector<64x128xf32>,
    return
  }
  func.func @transform_0(%arg0: i32) -> (i32, i32) {
    %c0_i32 = arith.constant 0 : i32
    %c0_i32_0 = arith.constant 0 : i32
    %c0_i32_1 = arith.constant 0 : i32
    return %c0_i32, %c0_i32_0 : i32, i32
  }
  func.func @transform_1(%arg0: i32) -> (i32, i32) {
    %c0_i32 = arith.constant 0 : i32
    %c0_i32_0 = arith.constant 0 : i32
    return %arg0, %c0_i32 : i32, i32
  }
  func.func @transform_2(%arg0: i32) -> (i32, i32) {
    %c0_i32 = arith.constant 0 : i32
    %c0_i32_0 = arith.constant 0 : i32
    %c0_i32_1 = arith.constant 0 : i32
    return %c0_i32, %c0_i32_0 : i32, i32
  }
  func.func @transform_3(%arg0: i32) -> (i32, i32) {
    %c0_i32 = arith.constant 0 : i32
    %c0_i32_0 = arith.constant 0 : i32
    %c0_i32_1 = arith.constant 0 : i32
    return %c0_i32, %c0_i32_0 : i32, i32
  }
  func.func @transform_4(%arg0: i32) -> (i32, i32) {
    %c0_i32 = arith.constant 0 : i32
    %c0_i32_0 = arith.constant 0 : i32
    %c0_i32_1 = arith.constant 0 : i32
    return %c0_i32, %c0_i32_0 : i32, i32
  }
  func.func @transform_5(%arg0: i32) -> (i32, i32) {
    %c0_i32 = arith.constant 0 : i32
    %c0_i32_0 = arith.constant 0 : i32
    %c0_i32_1 = arith.constant 0 : i32
    return %c0_i32, %c0_i32_0 : i32, i32
  }
  func.func @transform_6(%arg0: i32) -> (i32, i32) {
    %c0_i32 = arith.constant 0 : i32
    %c0_i32_0 = arith.constant 0 : i32
    %c0_i32_1 = arith.constant 0 : i32
    return %c0_i32, %c0_i32_0 : i32, i32
  }
  func.func @transform_7(%arg0: i32) -> (i32, i32) {
    %c0_i32 = arith.constant 0 : i32
    %c0_i32_0 = arith.constant 0 : i32
    return %arg0, %c0_i32 : i32, i32
  }
}

</mosaic_0001>

<bundles_post_ra>
// kernel: gated_rgcn_forward.1
= control target key start
LH: loop header
LB: loop body
LE: loop exit
PB: predicated region body
PF: predicated region fallthrough
CT: control target
= control target key end

     0   :  { %s2726_s24 = smov 0   ;;  %s4719_s0 = inlined_call_operand.vmem [shape: f32[128,128], index: 0, kind: input, shape index: {}, may-alias: {0,1}]   ;;  %s4720_s1 = inlined_call_operand.vmem [shape: f32[128,128], index: 1, kind: input, shape index: {}, may-alias: {0,1}]   ;;  %s4721_s2 = inlined_call_operand.vmem [shape: s32[128,1], index: 2, kind: input, shape index: {}]   ;;  %s4722_s3 = inlined_call_operand.vmem [shape: s32[1,128], index: 3, kind: input, shape index: {}]   ;;  %s4723_s4 = inlined_call_operand.vmem [shape: s32[128,1], index: 4, kind: input, shape index: {}]   ;;  %s4724_s5 = inlined_call_operand.vmem [shape: f32[512,256], index: 5, kind: input, shape index: {}]   ;;  %s4725_s6 = inlined_call_operand.vmem [shape: f32[1,256], index: 6, kind: input, shape index: {}]   ;;  %s4726_s7 = inlined_call_operand.vmem [shape: f32[128,128], index: 7, kind: output, shape index: {}]  }
   0x1 LB: > { %s2153_s25 = sadd.s32 4294967295, %s2681_s24   ;;  %p2157_p0 = scmp.ge.s32.totalorder %s2681_s24, 1  ;;  %s2681_s24 = sphi %s2726_s24, %s17_s24  }
   0x2   : > { %p238_p1 = scmp.lt.s32.totalorder %s2681_s24, 3 }
   0x4   : > { %p239_p2 = pnand %p2157_p0, %p238_p1 }
   0x6   : > { %242 = sbr.rel (%p239_p2) target bundleno = 1057 (0x421), region = 48 }
   0xb   : > { %v310_v0 = vld [vmem:[%s4721_s2 + $0x10] sm:$0xff]  ;;  %v308_v1 = vld [vmem:[%s4721_s2] sm:$0xff]  ;;  %v2683_v2 = vmov 0   ;;  %v311_v3 = vld [vmem:[%s4721_s2 + $0x18] sm:$0xff]  ;;  %v4760_v36 = vmov 0.0   ;;  %s2242_s15 = sshll.u32 %s2153_s25, 6 }
   0xc   : > { %2578 = vset.pattern.permute.xlu1 %v2683_v2  ;;  %2577 = vset.pattern.permute.xlu0 %v2683_v2  ;;  %v309_v4 = vld [vmem:[%s4721_s2 + $0x8] sm:$0xff]  ;;  %v312_v6 = vld [vmem:[%s4721_s2 + $0x20] sm:$0xff]  ;;  %v315_v7 = vld [vmem:[%s4721_s2 + $0x38] sm:$0xff]  ;;  %s2158_s22 = sshll.u32 %s2153_s25, 3 }
   0xd   : > { %331 = vperm.xlu1 %2578, %v310_v0   ;;  %325 = vperm.xlu0 %2577, %v308_v1   ;;  %v313_v5 = vld [vmem:[%s4721_s2 + $0x28] sm:$0xff]  ;;  %v314_v8 = vld [vmem:[%s4721_s2 + $0x30] sm:$0xff]  ;;  %v297_v9 = vld [vmem:[%s4719_s0 + $0x78] sm:$0xff]  ;;  %p271_p3 = scmp.lt.s32.totalorder %s2158_s22, 15 }
   0xe   : > { %2422 = vmatprep.subr.mxu0 %v297_v9  ;;  %v296_v10 = vld [vmem:[%s4719_s0 + $0x70] sm:$0xff]  ;;  %v317_v11 = vld [vmem:[%s4721_s2 + $0x48] sm:$0xff]  ;;  %v316_v12 = vld [vmem:[%s4721_s2 + $0x40] sm:$0xff]  ;;  %1111 = vmatprep.mubr.f32.mxu1 %v4760_v36 }
   0xf   : > { %2423 = vmatpush3.msra.mxu0 %v297_v9  ;;  %v295_v13 = vld [vmem:[%s4719_s0 + $0x68] sm:$0xff]  ;;  %v294_v14 = vld [vmem:[%s4719_s0 + $0x60] sm:$0xff]  ;;  %v319_v15 = vld [vmem:[%s4721_s2 + $0x58] sm:$0xff]  ;;  %s5089_s22 = smov (!%p271_p3, %s2158_s22), 15 }
  0x10   : > { %2424 = vmatprep.subr.mxu0 %v296_v10  ;;  %v318_v16 = vld [vmem:[%s4721_s2 + $0x50] sm:$0xff]  ;;  %v293_v17 = vld [vmem:[%s4719_s0 + $0x58] sm:$0xff]  ;;  %v321_v18 = vld [vmem:[%s4721_s2 + $0x68] sm:$0xff]  ;;  %s2159_s25 = sshll.u32 %s5089_s22, 3 }
  0x11   : > { %334 = vperm.xlu1 %2578, %v311_v3   ;;  %328 = vperm.xlu0 %2577, %v309_v4   ;;  %v320_v19 = vld [vmem:[%s4721_s2 + $0x60] sm:$0xff]  ;;  %v582_v20 = vld [vmem:[%s4723_s4 + $0x78] sm:$0xff]  ;;  %v292_v21 = vld [vmem:[%s4719_s0 + $0x50] sm:$0xff]  ;;  %s4583_s27 = scalar_lea.vmem %s4720_s1, %s2159_s25  ;;  %s4695_s9 = scalar_lea.vmem %s4726_s7, %s2159_s25 }
  0x12   : > { %2425 = vmatpush3.msra.mxu0 %v296_v10  ;;  %v598_v22 = vmul.u32 128, %v582_v20  ;;  %v291_v23 = vld [vmem:[%s4719_s0 + $0x48] sm:$0xff]  ;;  %v323_v24 = vld [vmem:[%s4721_s2 + $0x78] sm:$0xff]  ;;  %v322_v25 = vld [vmem:[%s4721_s2 + $0x70] sm:$0xff] }
  0x13   : > { %2426 = vmatprep.subr.mxu0 %v295_v13  ;;  %v581_v26 = vld [vmem:[%s4723_s4 + $0x70] sm:$0xff]  ;;  %v290_v27 = vld [vmem:[%s4719_s0 + $0x40] sm:$0xff]  ;;  %v580_v30 = vld [vmem:[%s4723_s4 + $0x68] sm:$0xff] }
  0x14   : > { %2427 = vmatpush3.msra.mxu0 %v295_v13  ;;  %v710_v28 = vadd.s32 128, %v598_v22  ;;  %v597_v29 = vmul.u32 128, %v581_v26  ;;  %v289_v31 = vld [vmem:[%s4719_s0 + $0x38] sm:$0xff]  ;;  %v596_v33 = vmul.u32 128, %v580_v30  ;;  %v288_v34 = vld [vmem:[%s4719_s0 + $0x30] sm:$0xff]  ;;  %v579_v35 = vld [vmem:[%s4723_s4 + $0x60] sm:$0xff] }
  0x15   : > { %340 = vperm.xlu1 %2578, %v313_v5   ;;  %337 = vperm.xlu0 %2577, %v312_v6   ;;  %v287_v37 = vld [vmem:[%s4719_s0 + $0x28] sm:$0xff]  ;;  %v595_v39 = vmul.u32 128, %v579_v35  ;;  %v578_v40 = vld [vmem:[%s4723_s4 + $0x58] sm:$0xff]  ;;  %v286_v41 = vld [vmem:[%s4719_s0 + $0x20] sm:$0xff] }
  0x16   : > { %2428 = vmatprep.subr.mxu0 %v294_v14  ;;  %v709_v32 = vadd.s32 128, %v597_v29  ;;  %v708_v38 = vadd.s32 128, %v596_v33  ;;  %v594_v43 = vmul.u32 128, %v578_v40  ;;  %v285_v44 = vld [vmem:[%s4719_s0 + $0x18] sm:$0xff]  ;;  %v577_v45 = vld [vmem:[%s4723_s4 + $0x50] sm:$0xff]  ;;  %v576_v49 = vld [vmem:[%s4723_s4 + $0x48] sm:$0xff] }
  0x17   : > { %2429 = vmatpush3.msra.mxu0 %v294_v14  ;;  %v707_v42 = vadd.s32 128, %v595_v39  ;;  %v284_v46 = vld [vmem:[%s4719_s0 + $0x10] sm:$0xff]  ;;  %v593_v48 = vmul.u32 128, %v577_v45  ;;  %v283_v50 = vld [vmem:[%s4719_s0 + $0x8] sm:$0xff]  ;;  %v592_v52 = vmul.u32 128, %v576_v49  ;;  %v282_v53 = vld [vmem:[%s4719_s0] sm:$0xff] }
  0x18   : > { %2430 = vmatprep.subr.mxu0 %v293_v17  ;;  %v706_v47 = vadd.s32 128, %v594_v43  ;;  %v575_v54 = vld [vmem:[%s4723_s4 + $0x40] sm:$0xff]  ;;  %v574_v57 = vld [vmem:[%s4723_s4 + $0x38] sm:$0xff]  ;;  %v573_v60 = vld [vmem:[%s4723_s4 + $0x30] sm:$0xff] }
  0x19   : > { %346 = vperm.xlu1 %2578, %v315_v7   ;;  %343 = vperm.xlu0 %2577, %v314_v8   ;;  %v705_v51 = vadd.s32 128, %v593_v48  ;;  %v704_v55 = vadd.s32 128, %v592_v52  ;;  %v591_v56 = vmul.u32 128, %v575_v54  ;;  %v590_v59 = vmul.u32 128, %v574_v57  ;;  %v572_v63 = vld [vmem:[%s4723_s4 + $0x28] sm:$0xff]  ;;  %v571_v2 = vld [vmem:[%s4723_s4 + $0x20] sm:$0xff] }
  0x1a   : > { %2431 = vmatpush3.msra.mxu0 %v293_v17  ;;  %v589_v62 = vmul.u32 128, %v573_v60  ;;  %v588_v1 = vmul.u32 128, %v572_v63  ;;  %v570_v5 = vld [vmem:[%s4723_s4 + $0x18] sm:$0xff]  ;;  %v569_v8 = vld [vmem:[%s4723_s4 + $0x10] sm:$0xff]  ;;  %v567_v14 = vld [vmem:[%s4723_s4] sm:$0xff] }
  0x1b   : > { %2432 = vmatprep.subr.mxu0 %v292_v21  ;;  %v703_v58 = vadd.s32 128, %v591_v56  ;;  %v702_v61 = vadd.s32 128, %v590_v59  ;;  %v587_v4 = vmul.u32 128, %v571_v2  ;;  %v586_v7 = vmul.u32 128, %v570_v5 }
  0x1c   : > { %2433 = vmatpush3.msra.mxu0 %v292_v21  ;;  %v701_v0 = vadd.s32 128, %v589_v62  ;;  %v700_v3 = vadd.s32 128, %v588_v1  ;;  %v585_v10 = vmul.u32 128, %v569_v8 }
  0x1d   : > { %352 = vperm.xlu1 %2578, %v317_v11   ;;  %349 = vperm.xlu0 %2577, %v316_v12   ;;  %v699_v6 = vadd.s32 128, %v587_v4  ;;  %v698_v9 = vadd.s32 128, %v586_v7  ;;  %v568_v11 = vld [vmem:[%s4723_s4 + $0x8] sm:$0xff] }
  0x1e   : > { %2434 = vmatprep.subr.mxu0 %v291_v23  ;;  %v697_v12 = vadd.s32 128, %v585_v10  ;;  %v584_v13 = vmul.u32 128, %v568_v11 }
  0x1f   : > { %2435 = vmatpush3.msra.mxu0 %v291_v23 }
  0x20   : > { %2436 = vmatprep.subr.mxu0 %v290_v27 }
  0x21   : > { %358 = vperm.xlu1 %2578, %v319_v15   ;;  %355 = vperm.xlu0 %2577, %v318_v16   ;;  %v696_v15 = vadd.s32 128, %v584_v13  ;;  %v583_v16 = vmul.u32 128, %v567_v14 }
  0x22   : > { %2437 = vmatpush3.msra.mxu0 %v290_v27 }
  0x23   : > { %2438 = vmatprep.subr.mxu0 %v289_v31  ;;  %v695_v17 = vadd.s32 128, %v583_v16 }
  0x24   : > { %2439 = vmatpush3.msra.mxu0 %v289_v31 }
  0x25   : > { %364 = vperm.xlu1 %2578, %v321_v18   ;;  %361 = vperm.xlu0 %2577, %v320_v19   ;;  %v306_v18 = vlaneseq }
  0x26   : > { %2440 = vmatprep.subr.mxu0 %v288_v34 }
  0x27   : > { %2441 = vmatpush3.msra.mxu0 %v288_v34  ;;  %v2879_v19 = vand.u32 127, %v306_v18 }
  0x28   : > { %2442 = vmatprep.subr.mxu0 %v287_v37 }
  0x29   : > { %370 = vperm.xlu1 %2578, %v323_v24   ;;  %367 = vperm.xlu0 %2577, %v322_v25  }
  0x2a   : > { %2443 = vmatpush3.msra.mxu0 %v287_v37 }
  0x2b   : > { %2444 = vmatprep.subr.mxu0 %v286_v41 }
  0x2c   : > { %2445 = vmatpush3.msra.mxu0 %v286_v41 }
  0x2d   : > { %757 = vperm.xlu1 %2578, %v710_v28   ;;  %645 = vperm.xlu0 %2577, %v598_v22   ;;  %v4734_v22 = vmov 1.0  }
  0x2e   : > { %2446 = vmatprep.subr.mxu0 %v285_v44 }
  0x2f   : > { %2447 = vmatpush3.msra.mxu0 %v285_v44 }
  0x30   : > { %2448 = vmatprep.subr.mxu0 %v284_v46 }
  0x31   : > { %754 = vperm.xlu1 %2578, %v709_v32   ;;  %642 = vperm.xlu0 %2577, %v597_v29  }
  0x32   : > { %2449 = vmatpush3.msra.mxu0 %v284_v46 }
  0x33   : > { %2450 = vmatprep.subr.mxu0 %v283_v50 }
  0x34   : > { %2451 = vmatpush3.msra.mxu0 %v283_v50 }
  0x35   : > { %751 = vperm.xlu1 %2578, %v708_v38   ;;  %639 = vperm.xlu0 %2577, %v596_v33   ;;  %v2913_v38 = vshrl.u32 %v306_v18, 7 }
  0x36   : > { %2452 = vmatprep.subr.mxu0 %v282_v53 }
  0x37   : > { %2453 = vmatpush3.msra.mxu0 %v282_v53  ;;  %4811 = vst [vmem:[#allocation2_spill] sm:$0xff] %v2913_v38  ;;  %v1002_v40 = vadd.s32 8, %v2913_v38  ;;  %v1003_v44 = vadd.s32 16, %v2913_v38  ;;  %v1004_v46 = vadd.s32 24, %v2913_v38 }
  0x39   : > { %748 = vperm.xlu1 %2578, %v707_v42   ;;  %636 = vperm.xlu0 %2577, %v595_v39   ;;  %v1009_v39 = vstv %s2242_s15  ;;  %v2924_v42 = vld [vmem:[%s4722_s3] ss:$0 sm:$0xff] }
  0x3a   : > { %v2919_v41 = vadd.s32 %v1009_v39, %v2913_v38  ;;  %v2937_v45 = vadd.s32 %v1009_v39, %v1003_v44  ;;  %v4856_v44 = vmov 0 }
  0x3c   : > { %4812 = vst [vmem:[#allocation3_spill] sm:$0xff] %v2937_v45  ;;  %v4884_v45 = vmov 0 }
  0x3d   : > { %745 = vperm.xlu1 %2578, %v706_v47   ;;  %633 = vperm.xlu0 %2577, %v594_v43   ;;  %v2926_v43 = vadd.s32 %v1009_v39, %v1002_v40  ;;  %v2942_v47 = vadd.s32 %v1009_v39, %v1004_v46 }
  0x3f   : > { %4813 = vst [vmem:[#allocation4_spill] sm:$0xff] %v2942_v47 }
  0x41   : > { %742 = vperm.xlu1 %2578, %v705_v51   ;;  %630 = vperm.xlu0 %2577, %v593_v48   ;;  %v1005_v48 = vadd.s32 32, %v2913_v38  ;;  %v1006_v51 = vadd.s32 40, %v2913_v38 }
  0x43   : > { %v2947_v49 = vadd.s32 %v1009_v39, %v1005_v48  ;;  %v2952_v53 = vadd.s32 %v1009_v39, %v1006_v51  ;;  %v4859_v51 = vmov 0 }
  0x45   : > { %739 = vperm.xlu1 %2578, %v704_v55   ;;  %627 = vperm.xlu0 %2577, %v592_v52   ;;  %4814 = vst [vmem:[#allocation5_spill] sm:$0xff] %v2947_v49  ;;  %4815 = vst [vmem:[#allocation6_spill] sm:$0xff] %v2952_v53  ;;  %v1007_v55 = vadd.s32 48, %v2913_v38 }
  0x47   : > { %v2957_v57 = vadd.s32 %v1009_v39, %v1007_v55 }
  0x49   : > { %736 = vperm.xlu1 %2578, %v703_v58   ;;  %624 = vperm.xlu0 %2577, %v591_v56   ;;  %4816 = vst [vmem:[#allocation7_spill] sm:$0xff] %v2957_v57  ;;  %v1008_v58 = vadd.s32 56, %v2913_v38 }
  0x4d   : > { %733 = vperm.xlu1 %2578, %v702_v61   ;;  %621 = vperm.xlu0 %2577, %v590_v59   ;;  %v2962_v59 = vadd.s32 %v1009_v39, %v1008_v58  ;;  %v4853_v39 = vmov 0  ;;  %v4864_v58 = vmov 0 }
  0x4f   : > { %4817 = vst [vmem:[#allocation8_spill] sm:$0xff] %v2962_v59 }
  0x51   : > { %730 = vperm.xlu1 %2578, %v701_v0   ;;  %618 = vperm.xlu0 %2577, %v589_v62  }
  0x55   : > { %727 = vperm.xlu1 %2578, %v700_v3   ;;  %615 = vperm.xlu0 %2577, %v588_v1  }
  0x59   : > { %724 = vperm.xlu1 %2578, %v699_v6   ;;  %612 = vperm.xlu0 %2577, %v587_v4  }
  0x5d   : > { %721 = vperm.xlu1 %2578, %v698_v9   ;;  %609 = vperm.xlu0 %2577, %v586_v7   ;;  %v2983_v7 = vadd.s32 256, %v2879_v19 }
  0x61   : > { %718 = vperm.xlu1 %2578, %v697_v12   ;;  %606 = vperm.xlu0 %2577, %v585_v10   ;;  %v2990_v10 = vadd.s32 128, %v2879_v19 }
  0x65   : > { %715 = vperm.xlu1 %2578, %v696_v15   ;;  %603 = vperm.xlu0 %2577, %v584_v13  }
  0x69   : > { %712 = vperm.xlu1 %2578, %v695_v17   ;;  %600 = vperm.xlu0 %2577, %v583_v16   ;;  %v4820_v17 = vmov 0 }
  0x88   : > { %v332_v20 = vpop.permute.xlu1 %331  ;;  %v326_v21 = vpop.permute.xlu0 %325 }
  0x89   : > { %vm372_vm0 = vcmp.eq.s32.totalorder %v2879_v19, %v326_v21  ;;  %vm374_vm1 = vcmp.eq.s32.totalorder %v2879_v19, %v332_v20  ;;  %v4823_v20 = vmov 0  ;;  %v4826_v21 = vmov 0 }
  0x8a   : > { %2454 = vmatprep.mubr.msk.f32.mxu0 %vm372_vm0, %v4734_v22  ;;  %vm4727_vm0 = vcmp.eq.s32.totalorder %v2919_v41, %v2924_v42 }
  0x8c   : > { %v335_v23 = vpop.permute.xlu1 %334  ;;  %v329_v24 = vpop.permute.xlu0 %328 }
  0x8d   : > { %vm373_vm2 = vcmp.eq.s32.totalorder %v2879_v19, %v329_v24  ;;  %vm375_vm3 = vcmp.eq.s32.totalorder %v2879_v19, %v335_v23  ;;  %v4829_v23 = vmov 0  ;;  %v4832_v24 = vmov 0 }
  0x8e   : > { %2455 = vmatmul.mubr.msk.f32.vlgmr.msra.gmra.mxu0 %vm373_vm2, %v4734_v22 }
  0x8f   : > { %2457 = vmatprep.mubr.msk.f32.mxu0 %vm374_vm1, %v4734_v22 }
  0x90   : > { %v341_v25 = vpop.permute.xlu1 %340  ;;  %v338_v26 = vpop.permute.xlu0 %337 }
  0x91   : > { %vm376_vm4 = vcmp.eq.s32.totalorder %v2879_v19, %v338_v26  ;;  %vm377_vm5 = vcmp.eq.s32.totalorder %v2879_v19, %v341_v25  ;;  %v4835_v26 = vmov 0 }
  0x92   : > { %2458 = vmatmul.mubr.msk.f32.gmra.mxu0 %vm375_vm3, %v4734_v22 }
  0x93   : > { %2460 = vmatprep.mubr.msk.f32.mxu0 %vm376_vm4, %v4734_v22 }
  0x94   : > { %v347_v27 = vpop.permute.xlu1 %346  ;;  %v344_v28 = vpop.permute.xlu0 %343 }
  0x95   : > { %vm378_vm6 = vcmp.eq.s32.totalorder %v2879_v19, %v344_v28  ;;  %vm379_vm7 = vcmp.eq.s32.totalorder %v2879_v19, %v347_v27  ;;  %v4838_v28 = vmov 0 }
  0x96   : > { %2461 = vmatmul.mubr.msk.f32.gmra.mxu0 %vm377_vm5, %v4734_v22 }
  0x97   : > { %2463 = vmatprep.mubr.msk.f32.mxu0 %vm378_vm6, %v4734_v22 }
  0x98   : > { %v353_v29 = vpop.permute.xlu1 %352  ;;  %v350_v30 = vpop.permute.xlu0 %349 }
  0x99   : > { %vm380_vm8 = vcmp.eq.s32.totalorder %v2879_v19, %v350_v30  ;;  %vm381_vm9 = vcmp.eq.s32.totalorder %v2879_v19, %v353_v29 }
  0x9a   : > { %2464 = vmatmul.mubr.msk.f32.gmra.mxu0 %vm379_vm7, %v4734_v22 }
  0x9b   : > { %2466 = vmatprep.mubr.msk.f32.mxu0 %vm380_vm8, %v4734_v22 }
  0x9c   : > { %v359_v31 = vpop.permute.xlu1 %358  ;;  %v356_v32 = vpop.permute.xlu0 %355 }
  0x9d   : > { %vm382_vm10 = vcmp.eq.s32.totalorder %v2879_v19, %v356_v32  ;;  %vm383_vm11 = vcmp.eq.s32.totalorder %v2879_v19, %v359_v31  ;;  %v4841_v31 = vmov 0  ;;  %v4844_v32 = vmov 0 }
  0x9e   : > { %2467 = vmatmul.mubr.msk.f32.gmra.mxu0 %vm381_vm9, %v4734_v22 }
  0x9f   : > { %2469 = vmatprep.mubr.msk.f32.mxu0 %vm382_vm10, %v4734_v22 }
  0xa0   : > { %v365_v33 = vpop.permute.xlu1 %364  ;;  %v362_v34 = vpop.permute.xlu0 %361 }
  0xa1   : > { %vm384_vm12 = vcmp.eq.s32.totalorder %v2879_v19, %v362_v34  ;;  %vm385_vm13 = vcmp.eq.s32.totalorder %v2879_v19, %v365_v33  ;;  %v4847_v34 = vmov 0 }
  0xa2   : > { %2470 = vmatmul.mubr.msk.f32.gmra.mxu0 %vm383_vm11, %v4734_v22 }
  0xa3   : > { %2472 = vmatprep.mubr.msk.f32.mxu0 %vm384_vm12, %v4734_v22 }
  0xa4   : > { %v368_v35 = vpop.permute.xlu0 %367  ;;  %v371_v37 = vpop.permute.xlu1 %370 }
  0xa5   : > { %vm386_vm14 = vcmp.eq.s32.totalorder %v2879_v19, %v368_v35  ;;  %vm387_vm15 = vcmp.eq.s32.totalorder %v2879_v19, %v371_v37  ;;  %v4850_v35 = vmov 0 }
  0xa6   : > { %2473 = vmatmul.mubr.msk.f32.gmra.mxu0 %vm385_vm13, %v4734_v22 }
  0xa7   : > { %2475 = vmatprep.mubr.msk.f32.mxu0 %vm386_vm14, %v4734_v22 }
  0xa8   : > { %v758_v50 = vpop.permute.xlu1 %757  ;;  %v646_v52 = vpop.permute.xlu0 %645 }
  0xa9   : > { %vm804_vm8 = vcmp.lt.s32.totalorder %v2879_v19, %v758_v50  ;;  %vm806_vm9 = vcmp.lt.s32.totalorder %v2983_v7, %v758_v50  ;;  %vm694_vm11 = vcmp.ge.s32.totalorder %v2983_v7, %v646_v52  ;;  %vm693_vm14 = vcmp.ge.s32.totalorder %v2990_v10, %v646_v52 }
  0xaa   : > { %2476 = vmatmul.mubr.msk.f32.gmra.mxu0 %vm387_vm15, %v4734_v22  ;;  %vm805_vm15 = vcmp.lt.s32.totalorder %v2990_v10, %v758_v50  ;;  %vm3012_vm5 = vmand %vm694_vm11, %vm806_vm9  ;;  %vm4825_vm9 = vcmp.ge.s32.totalorder %v2879_v19, %v646_v52 }
  0xab   : > { %2510 = vmatprep.mubr.msk.f32.mxu0 %vm4727_vm0, %v4734_v22  ;;  %vm3026_vm10 = vmand %vm693_vm14, %vm805_vm15  ;;  %v2241_v50 = vsel %vm3012_vm5, 1.0, %v4760_v36 }
  0xac   : > { %v755_v54 = vpop.permute.xlu1 %754  ;;  %v643_v56 = vpop.permute.xlu0 %642  ;;  %v4824_v20 = vsel %vm3026_vm10, 4294967295, %v4823_v20  ;;  %vm3034_vm11 = vmand %vm4825_vm9, %vm804_vm8 }
  0xad   : > { %vm801_vm12 = vcmp.lt.s32.totalorder %v2879_v19, %v755_v54  ;;  %vm689_vm13 = vcmp.ge.s32.totalorder %v2879_v19, %v643_v56  ;;  %vm802_vm7 = vcmp.lt.s32.totalorder %v2990_v10, %v755_v54  ;;  %vm690_vm6 = vcmp.ge.s32.totalorder %v2990_v10, %v643_v56 }
  0xae   : > { %vm803_vm4 = vcmp.lt.s32.totalorder %v2983_v7, %v755_v54  ;;  %vm691_vm3 = vcmp.ge.s32.totalorder %v2983_v7, %v643_v56  ;;  %vm3018_vm2 = vmand %vm689_vm13, %vm801_vm12  ;;  %v4827_v21 = vsel %vm3034_vm11, 4294967295, %v4826_v21  ;;  %v2239_v56 = vsel %vm3034_vm11, 1.0, %v4760_v36 }
  0xaf   : > { %v4821_v17 = vsel %vm3018_vm2, 4294967295, %v4820_v17  ;;  %4828 = vst [vmem:[#allocation10_spill] sm:$0xff] %v4827_v21  ;;  %vm3038_vm12 = vmand %vm690_vm6, %vm802_vm7  ;;  %v4901_v21 = vmov 0 }
  0xb0   : > { %v752_v60 = vpop.permute.xlu1 %751  ;;  %v640_v61 = vpop.permute.xlu0 %639  ;;  %4822 = vst [vmem:[#allocation9_spill] sm:$0xff] %v4821_v17  ;;  %v4830_v23 = vsel %vm3038_vm12, 4294967295, %v4829_v23  ;;  %vm3044_vm14 = vmand %vm691_vm3, %vm803_vm4  ;;  %v3140_v54 = vsel %vm3038_vm12, 1.0, %v4760_v36 }
  0xb1   : > { %vm798_vm1 = vcmp.lt.s32.totalorder %v2879_v19, %v752_v60  ;;  %vm686_vm0 = vcmp.ge.s32.totalorder %v2879_v19, %v640_v61  ;;  %4831 = vst [vmem:[#allocation11_spill] sm:$0xff] %v4830_v23  ;;  %vm799_vm13 = vcmp.lt.s32.totalorder %v2990_v10, %v752_v60  ;;  %vm687_vm2 = vcmp.ge.s32.totalorder %v2990_v10, %v640_v61 }
  0xb2   : > { %v4833_v24 = vsel %vm3044_vm14, 4294967295, %v4832_v24  ;;  %vm800_vm15 = vcmp.lt.s32.totalorder %v2983_v7, %v752_v60  ;;  %vm688_vm10 = vcmp.ge.s32.totalorder %v2983_v7, %v640_v61  ;;  %vm3052_vm8 = vmand %vm686_vm0, %vm798_vm1 }
  0xb3   : > { %4834 = vst [vmem:[#allocation12_spill] sm:$0xff] %v4833_v24  ;;  %v4836_v26 = vsel %vm3052_vm8, 4294967295, %v4835_v26  ;;  %vm3061_vm3 = vmand %vm687_vm2, %vm799_vm13  ;;  %v3157_v61 = vsel %vm3052_vm8, 1.0, %v4760_v36 }
  0xb4   : > { %v2966_v62 = vpop.permute.xlu1 %748  ;;  %v637_v63 = vpop.permute.xlu0 %636  ;;  %4837 = vst [vmem:[#allocation13_spill] sm:$0xff] %v4836_v26  ;;  %v4839_v28 = vsel %vm3061_vm3, 4294967295, %v4838_v28  ;;  %vm3072_vm0 = vmand %vm688_vm10, %vm800_vm15 }
  0xb5   : > { %vm795_vm6 = vcmp.lt.s32.totalorder %v2879_v19, %v2966_v62  ;;  %vm683_vm7 = vcmp.ge.s32.totalorder %v2879_v19, %v637_v63  ;;  %4840 = vst [vmem:[#allocation14_spill] sm:$0xff] %v4839_v28  ;;  %vm796_vm4 = vcmp.lt.s32.totalorder %v2990_v10, %v2966_v62  ;;  %vm684_vm9 = vcmp.ge.s32.totalorder %v2990_v10, %v637_v63 }
  0xb6   : > { %v4842_v31 = vsel %vm3072_vm0, 4294967295, %v4841_v31  ;;  %vm797_vm1 = vcmp.lt.s32.totalorder %v2983_v7, %v2966_v62  ;;  %vm685_vm2 = vcmp.ge.s32.totalorder %v2983_v7, %v637_v63  ;;  %vm3079_vm13 = vmand %vm683_vm7, %vm795_vm6 }
  0xb7   : > { %4843 = vst [vmem:[#allocation15_spill] sm:$0xff] %v4842_v31  ;;  %v4845_v32 = vsel %vm3079_vm13, 4294967295, %v4844_v32  ;;  %vm3089_vm10 = vmand %vm684_vm9, %vm796_vm4 }
  0xb8   : > { %v2968_v0 = vpop.permute.xlu1 %745  ;;  %v2970_v1 = vpop.permute.xlu0 %633  ;;  %4846 = vst [vmem:[#allocation16_spill] sm:$0xff] %v4845_v32  ;;  %v4848_v34 = vsel %vm3089_vm10, 4294967295, %v4847_v34  ;;  %vm3097_vm7 = vmand %vm685_vm2, %vm797_vm1  ;;  %v3185_v38 = vsel %vm3089_vm10, 1.0, %v4760_v36 }
  0xb9   : > { %vm792_vm14 = vcmp.lt.s32.totalorder %v2879_v19, %v2968_v0  ;;  %vm680_vm3 = vcmp.ge.s32.totalorder %v2879_v19, %v2970_v1  ;;  %4849 = vst [vmem:[#allocation17_spill] sm:$0xff] %v4848_v34  ;;  %vm793_vm15 = vcmp.lt.s32.totalorder %v2990_v10, %v2968_v0  ;;  %vm681_vm6 = vcmp.ge.s32.totalorder %v2990_v10, %v2970_v1 }
  0xba   : > { %v4851_v35 = vsel %vm3097_vm7, 4294967295, %v4850_v35  ;;  %vm794_vm13 = vcmp.lt.s32.totalorder %v2983_v7, %v2968_v0  ;;  %vm682_vm0 = vcmp.ge.s32.totalorder %v2983_v7, %v2970_v1  ;;  %vm3107_vm4 = vmand %vm680_vm3, %vm792_vm14  ;;  %vm4862_vm3 = vnez %v4821_v17 }
  0xbb   : > { %4852 = vst [vmem:[#allocation18_spill] sm:$0xff] %v4851_v35  ;;  %v4854_v39 = vsel %vm3107_vm4, 4294967295, %v4853_v39  ;;  %vm3117_vm2 = vmand %vm681_vm6, %vm793_vm15  ;;  %v3135_v52 = vsel %vm4862_vm3, 1.0, %v4760_v36  ;;  %vm4863_vm15 = vnez %v4824_v20  ;;  %vm4868_vm6 = vnez %v4842_v31  ;;  %v5007_v20 = vld [vmem:[#allocation9_spill] sm:$0xff] }
  0xbc   : > { %v2972_v2 = vpop.permute.xlu1 %742  ;;  %v2974_v3 = vpop.permute.xlu0 %630  ;;  %4855 = vst [vmem:[#allocation19_spill] sm:$0xff] %v4854_v39  ;;  %v4857_v44 = vsel %vm3117_vm2, 4294967295, %v4856_v44  ;;  %vm3128_vm14 = vmand %vm682_vm0, %vm794_vm13  ;;  %v2240_v55 = vsel %vm4863_vm15, 1.0, %v4760_v36  ;;  %vm4867_vm13 = vnez %v4839_v28  ;;  %v3167_v63 = vsel %vm4868_vm6, 1.0, %v4760_v36  ;;  %v5010_v16 = vld [vmem:[#allocation14_spill] sm:$0xff] }
  0xbd   : > { %vm789_vm9 = vcmp.lt.s32.totalorder %v2879_v19, %v2972_v2  ;;  %vm677_vm1 = vcmp.ge.s32.totalorder %v2879_v19, %v2974_v3  ;;  %4858 = vst [vmem:[#allocation20_spill] sm:$0xff] %v4857_v44  ;;  %v4860_v51 = vsel %vm3128_vm14, 4294967295, %v4859_v51  ;;  %v3162_v62 = vsel %vm4867_vm13, 1.0, %v4760_v36 }
  0xbe   : > { %4861 = vst [vmem:[#allocation21_spill] sm:$0xff] %v4860_v51  ;;  %vm3148_vm0 = vmand %vm677_vm1, %vm789_vm9  ;;  %vm4869_vm9 = vnez %v4833_v24  ;;  %v3175_v1 = vsel %vm3107_vm4, 1.0, %v4760_v36  ;;  %vm4870_vm1 = vnez %v4845_v32  ;;  %v3190_v59 = vsel %vm3097_vm7, 1.0, %v4760_v36 }
  0xbf   : > { %v4865_v58 = vsel %vm3148_vm0, 4294967295, %v4864_v58  ;;  %v2238_v0 = vsel %vm4869_vm9, 1.0, %v4760_v36  ;;  %v3180_v22 = vsel %vm4870_vm1, 1.0, %v4760_v36  ;;  %vm678_vm1 = vcmp.ge.s32.totalorder %v2990_v10, %v2974_v3 }
  0xc0   : > { %v2976_v4 = vpop.permute.xlu1 %739  ;;  %v2978_v5 = vpop.permute.xlu0 %627  ;;  %4866 = vst [vmem:[#allocation22_spill] sm:$0xff] %v4865_v58  ;;  %v3201_v57 = vsel %vm3117_vm2, 1.0, %v4760_v36  ;;  %v3214_v47 = vsel %vm3128_vm14, 1.0, %v4760_v36  ;;  %v3219_v39 = vsel %vm3148_vm0, 1.0, %v4760_v36  ;;  %vm4871_vm14 = vcmp.lt.s32.totalorder %v2990_v10, %v2972_v2  ;;  %v1586_v58 = vld [vmem:[%s4724_s5 + $0xf8] sm:$0xff] }
  0xc1   : > { %vm3234_vm0 = vmand %vm678_vm1, %vm4871_vm14  ;;  %v4872_v36 = vmov 0  ;;  %vm4874_vm2 = vcmp.lt.s32.totalorder %v2983_v7, %v2972_v2  ;;  %vm4875_vm14 = vcmp.ge.s32.totalorder %v2983_v7, %v2974_v3  ;;  %v4880_v3 = vmov 0 }
  0xc2   : > { %v4873_v36 = vsel %vm3234_vm0, 4294967295, %v4872_v36  ;;  %vm3252_vm1 = vmand %vm4875_vm14, %vm4874_vm2  ;;  %vm4878_vm2 = vcmp.lt.s32.totalorder %v2879_v19, %v2976_v4  ;;  %vm4879_vm14 = vcmp.ge.s32.totalorder %v2879_v19, %v2978_v5  ;;  %vm4882_vm13 = vcmp.lt.s32.totalorder %v2990_v10, %v2976_v4 }
  0xc3   : > { %vm3272_vm6 = vmand %vm4879_vm14, %vm4878_vm2  ;;  %vm4883_vm2 = vcmp.ge.s32.totalorder %v2990_v10, %v2978_v5  ;;  %vm4886_vm3 = vcmp.lt.s32.totalorder %v2983_v7, %v2976_v4  ;;  %v4888_v35 = vmov 0  ;;  %v4892_v4 = vmov 0 }
  0xc4   : > { %v2980_v6 = vpop.permute.xlu1 %736  ;;  %v2985_v8 = vpop.permute.xlu0 %624  ;;  %v4881_v3 = vsel %vm3272_vm6, 4294967295, %v4880_v3  ;;  %vm3290_vm14 = vmand %vm4883_vm2, %vm4882_vm13  ;;  %vm4887_vm13 = vcmp.ge.s32.totalorder %v2983_v7, %v2978_v5 }
  0xc5   : > { %v4885_v45 = vsel %vm3290_vm14, 4294967295, %v4884_v45  ;;  %vm3308_vm2 = vmand %vm4887_vm13, %vm4886_vm3  ;;  %vm4890_vm4 = vcmp.lt.s32.totalorder %v2879_v19, %v2980_v6  ;;  %vm4891_vm8 = vcmp.ge.s32.totalorder %v2879_v19, %v2985_v8  ;;  %vm4899_vm9 = vcmp.lt.s32.totalorder %v2983_v7, %v2980_v6 }
  0xc6   : > { %v4889_v35 = vsel %vm3308_vm2, 4294967295, %v4888_v35  ;;  %vm3322_vm7 = vmand %vm4891_vm8, %vm4890_vm4  ;;  %vm4894_vm8 = vcmp.lt.s32.totalorder %v2990_v10, %v2980_v6  ;;  %vm4895_vm4 = vcmp.ge.s32.totalorder %v2990_v10, %v2985_v8 }
  0xc7   : > { %v4893_v4 = vsel %vm3322_vm7, 4294967295, %v4892_v4  ;;  %vm3342_vm12 = vmand %vm4895_vm4, %vm4894_vm8  ;;  %vm4900_vm8 = vcmp.ge.s32.totalorder %v2983_v7, %v2985_v8  ;;  %v4905_v8 = vmov 0 }
  0xc8   : > { %v3002_v13 = vpop.permute.xlu1 %733  ;;  %v3008_v14 = vpop.permute.xlu0 %621  ;;  %vm3357_vm4 = vmand %vm4900_vm8, %vm4899_vm9 }
  0xc9   : > { %v4902_v21 = vsel %vm3357_vm4, 4294967295, %v4901_v21  ;;  %vm4903_vm9 = vcmp.lt.s32.totalorder %v2879_v19, %v3002_v13  ;;  %vm4904_vm8 = vcmp.ge.s32.totalorder %v2879_v19, %v3008_v14 }
  0xcc   : > { %v3059_v27 = vpop.permute.xlu1 %730  ;;  %v3068_v29 = vpop.permute.xlu0 %618 }
  0xd0   : > { %v3115_v40 = vpop.permute.xlu1 %727  ;;  %v3121_v46 = vpop.permute.xlu0 %615 }
  0xd4   : > { %v3209_v49 = vpop.permute.xlu1 %724  ;;  %v3229_v51 = vpop.permute.xlu0 %612 }
  0xd8   : > { %v3314_v34 = vpop.permute.xlu1 %721  ;;  %v3334_v5 = vpop.permute.xlu0 %609 }
 0x14e   : > { %v2987_v9 = vpop.f32.mrf.mxu0 }
 0x150   : > { %v2992_v11 = vpop.f32.mrf.mxu0 }
 0x152   : > { %v2998_v12 = vpop.f32.mrf.mxu0 }
 0x154   : > { %v3010_v15 = vpop.f32.mrf.mxu0 }
 0x156   : > { %v3024_v18 = vpop.f32.mrf.mxu0 }
 0x158   : > { %v3050_v25 = vpop.f32.mrf.mxu0 }
 0x15a   : > { %v3070_v30 = vpop.f32.mrf.mxu0 }
 0x15c   : > { %v3087_v33 = vpop.f32.mrf.mxu0 }
 0x15e   : > { %v3105_v37 = vpop.f32.mrf.mxu0 }
 0x160   : > { %v3123_v48 = vpop.f32.mrf.mxu0 }
 0x162   : > { %v3152_v60 = vpop.f32.mrf.mxu0 }
 0x164   : > { %v3203_v53 = vpop.f32.mrf.mxu0 }
 0x166   : > { %v2474_v44 = vpop.f32.mrf.mxu0 }
 0x168   : > { %v3264_v2 = vpop.f32.mrf.mxu0 }
 0x16a   : > { %v2477_v32 = vpop.f32.mrf.mxu0 }
 0x16b   : > { %v998_v26 = vmul.f32 %v2477_v32, %v2241_v50  ;;  %v997_v31 = vmul.f32 %v2477_v32, %v2240_v55  ;;  %v996_v28 = vmul.f32 %v2477_v32, %v2239_v56  ;;  %v4896_v50 = vmov 0 }
 0x16c   : > { %v556_v32 = vpop.f32.mrf.mxu0  ;;  %v4897_v50 = vsel %vm3342_vm12, 4294967295, %v4896_v50  ;;  %v4898_v55 = vmov 0.0  }
 0x16d   : > { %v2225_v56 = vsel %vm3234_vm0, 1.0, %v4898_v55  ;;  %v993_v17 = vmul.f32 %v3135_v52, %v556_v32  ;;  %v994_v24 = vmul.f32 %v3140_v54, %v556_v32  ;;  %v995_v23 = vmul.f32 %v2238_v0, %v556_v32  ;;  %1047 = vmatprep.subr.mxu1 %v997_v31  ;;  %2478 = vmatprep.subr.mxu0 %v998_v26  ;;  %vm3376_vm0 = vmand %vm4904_vm8, %vm4903_vm9 }
 0x16e   : > { %v2226_v6 = vsel %vm3252_vm1, 1.0, %v4898_v55  ;;  %1048 = vmatpush1.msra.mxu1 %v996_v28  ;;  %2479 = vmatpush3.msra.mxu0 %v998_v26  ;;  %v4906_v8 = vsel %vm3376_vm0, 4294967295, %v4905_v8  ;;  %v3385_v31 = vsel %vm3272_vm6, 1.0, %v4898_v55  ;;  %v991_v26 = vmul.f32 %v2474_v44, %v3162_v62 }
 0x16f   : > { %v992_v28 = vmul.f32 %v2474_v44, %v3167_v63  ;;  %1049 = vmatprep.subr.mxu1 %v994_v24  ;;  %2480 = vmatprep.subr.mxu0 %v995_v23  ;;  %vm4907_vm9 = vcmp.lt.s32.totalorder %v2990_v10, %v3002_v13  ;;  %vm4908_vm8 = vcmp.ge.s32.totalorder %v2990_v10, %v3008_v14  ;;  %v4909_v52 = vmov 0  ;;  %v3419_v63 = vpop.permute.xlu1 %718 }
 0x170   : > { %vm3395_vm3 = vmand %vm4908_vm8, %vm4907_vm9  ;;  %v2222_v24 = vsel %vm3290_vm14, 1.0, %v4898_v55  ;;  %v990_v54 = vmul.f32 %v2474_v44, %v3157_v61  ;;  %1050 = vmatpush1.msra.mxu1 %v993_v17  ;;  %2481 = vmatpush3.msra.mxu0 %v995_v23  ;;  %vm4911_vm9 = vcmp.lt.s32.totalorder %v2983_v7, %v3002_v13  ;;  %vm4912_vm8 = vcmp.ge.s32.totalorder %v2983_v7, %v3008_v14 }
 0x171   : > { %v4910_v52 = vsel %vm3395_vm3, 4294967295, %v4909_v52  ;;  %vm3413_vm6 = vmand %vm4912_vm8, %vm4911_vm9  ;;  %v4913_v62 = vmov 0  ;;  %v2223_v17 = vsel %vm3308_vm2, 1.0, %v4898_v55  ;;  %v988_v23 = vmul.f32 %v3185_v38, %v3264_v2  ;;  %1051 = vmatprep.subr.mxu1 %v991_v26  ;;  %2482 = vmatprep.subr.mxu0 %v992_v28  ;;  %v3442_v38 = vpop.permute.xlu0 %606 }
 0x172   : > { %v4914_v62 = vsel %vm3413_vm6, 4294967295, %v4913_v62  ;;  %v989_v13 = vmul.f32 %v3190_v59, %v3264_v2  ;;  %vm4915_vm9 = vcmp.lt.s32.totalorder %v2879_v19, %v3059_v27  ;;  %vm4916_vm8 = vcmp.ge.s32.totalorder %v2879_v19, %v3068_v29  ;;  %1052 = vmatpush1.msra.mxu1 %v990_v54  ;;  %2483 = vmatpush3.msra.mxu0 %v992_v28 }
 0x173   : > { %vm3434_vm13 = vmand %vm4916_vm8, %vm4915_vm9  ;;  %v4917_v14 = vmov 0  ;;  %v2218_v59 = vsel %vm3322_vm7, 1.0, %v4898_v55  ;;  %v987_v44 = vmul.f32 %v3180_v22, %v3264_v2  ;;  %vm4919_vm9 = vcmp.lt.s32.totalorder %v2990_v10, %v3059_v27  ;;  %1053 = vmatprep.subr.mxu1 %v988_v23  ;;  %v3535_v54 = vpop.permute.xlu1 %715 }
 0x174   : > { %v4918_v14 = vsel %vm3434_vm13, 4294967295, %v4917_v14  ;;  %vm4920_vm8 = vcmp.ge.s32.totalorder %v2990_v10, %v3068_v29  ;;  %v4921_v61 = vmov 0  ;;  %v2219_v0 = vsel %vm3342_vm12, 1.0, %v4898_v55  ;;  %2484 = vmatprep.subr.mxu0 %v989_v13 }
 0x175   : > { %vm3455_vm10 = vmand %vm4920_vm8, %vm4919_vm9  ;;  %v985_v22 = vmul.f32 %v3152_v60, %v3201_v57  ;;  %v986_v2 = vmul.f32 %v3152_v60, %v3214_v47  ;;  %vm4923_vm9 = vcmp.lt.s32.totalorder %v2983_v7, %v3059_v27  ;;  %vm4924_vm8 = vcmp.ge.s32.totalorder %v2983_v7, %v3068_v29  ;;  %1054 = vmatpush1.msra.mxu1 %v987_v44 }
 0x176   : > { %v4922_v61 = vsel %vm3455_vm10, 4294967295, %v4921_v61  ;;  %vm3474_vm7 = vmand %vm4924_vm8, %vm4923_vm9  ;;  %v4925_v32 = vmov 0  ;;  %v2220_v47 = vsel %vm3357_vm4, 1.0, %v4898_v55  ;;  %v984_v57 = vmul.f32 %v3152_v60, %v3175_v1  ;;  %2485 = vmatpush3.msra.mxu0 %v989_v13 }
 0x177   : > { %v4926_v32 = vsel %vm3474_vm7, 4294967295, %v4925_v32  ;;  %vm4927_vm9 = vcmp.lt.s32.totalorder %v2879_v19, %v3115_v40  ;;  %vm4928_vm8 = vcmp.ge.s32.totalorder %v2879_v19, %v3121_v46  ;;  %v4929_v27 = vmov 0  ;;  %1055 = vmatprep.subr.mxu1 %v985_v22  ;;  %2486 = vmatprep.subr.mxu0 %v986_v2 }
 0x178   : > { %vm3493_vm14 = vmand %vm4928_vm8, %vm4927_vm9  ;;  %v2215_v29 = vsel %vm3376_vm0, 1.0, %v4898_v55  ;;  %v982_v60 = vmul.f32 %v2225_v56, %v3203_v53  ;;  %v983_v1 = vmul.f32 %v2226_v6, %v3203_v53  ;;  %vm4931_vm2 = vcmp.lt.s32.totalorder %v2990_v10, %v3115_v40  ;;  %1056 = vmatpush1.msra.mxu1 %v984_v57  ;;  %2487 = vmatpush3.msra.mxu0 %v986_v2 }
 0x179   : > { %v4930_v27 = vsel %vm3493_vm14, 4294967295, %v4929_v27  ;;  %vm4932_vm9 = vcmp.ge.s32.totalorder %v2990_v10, %v3121_v46  ;;  %v4933_v26 = vmov 0  ;;  %v2216_v56 = vsel %vm3395_vm3, 1.0, %v4898_v55 }
 0x17a   : > { %vm3510_vm8 = vmand %vm4932_vm9, %vm4931_vm2  ;;  %v981_v6 = vmul.f32 %v3219_v39, %v3203_v53  ;;  %vm4935_vm2 = vcmp.lt.s32.totalorder %v2983_v7, %v3115_v40  ;;  %vm4936_vm9 = vcmp.ge.s32.totalorder %v2983_v7, %v3121_v46  ;;  %v4937_v28 = vmov 0  ;;  %1057 = vmatprep.subr.mxu1 %v982_v60  ;;  %2488 = vmatprep.subr.mxu0 %v983_v1 }
 0x17b   : > { %v4934_v26 = vsel %vm3510_vm8, 4294967295, %v4933_v26  ;;  %vm3529_vm4 = vmand %vm4936_vm9, %vm4935_vm2  ;;  %v2217_v53 = vsel %vm3413_vm6, 1.0, %v4898_v55  ;;  %v979_v39 = vmul.f32 %v3105_v37, %v2222_v24  ;;  %v980_v40 = vmul.f32 %v3105_v37, %v2223_v17  ;;  %v3556_v24 = vpop.permute.xlu0 %603  ;;  %2489 = vmatpush3.msra.mxu0 %v983_v1 }
 0x17c   : > { %v4938_v28 = vsel %vm3529_vm4, 4294967295, %v4937_v28  ;;  %vm4939_vm2 = vcmp.lt.s32.totalorder %v2879_v19, %v3209_v49  ;;  %vm4940_vm9 = vcmp.ge.s32.totalorder %v2879_v19, %v3229_v51  ;;  %v4941_v46 = vmov 0  ;;  %1058 = vmatpush1.msra.mxu1 %v981_v6 }
 0x17d   : > { %vm3548_vm12 = vmand %vm4940_vm9, %vm4939_vm2  ;;  %v2212_v17 = vsel %vm3434_vm13, 1.0, %v4898_v55  ;;  %v978_v23 = vmul.f32 %v3105_v37, %v3385_v31  ;;  %vm4943_vm2 = vcmp.lt.s32.totalorder %v2990_v10, %v3209_v49  ;;  %vm4944_vm9 = vcmp.ge.s32.totalorder %v2990_v10, %v3229_v51  ;;  %1059 = vmatprep.subr.mxu1 %v979_v39  ;;  %2490 = vmatprep.subr.mxu0 %v980_v40 }
 0x17e   : > { %v4942_v46 = vsel %vm3548_vm12, 4294967295, %v4941_v46  ;;  %vm3569_vm0 = vmand %vm4944_vm9, %vm4943_vm2  ;;  %v4945_v13 = vmov 0  ;;  %v2213_v44 = vsel %vm3455_vm10, 1.0, %v4898_v55  ;;  %v976_v37 = vmul.f32 %v2219_v0, %v3123_v48  ;;  %2491 = vmatpush3.msra.mxu0 %v980_v40 }
 0x17f   : > { %v4946_v13 = vsel %vm3569_vm0, 4294967295, %v4945_v13  ;;  %v977_v31 = vmul.f32 %v2220_v47, %v3123_v48  ;;  %vm4947_vm13 = vcmp.lt.s32.totalorder %v2983_v7, %v3209_v49  ;;  %vm4948_vm2 = vcmp.ge.s32.totalorder %v2983_v7, %v3229_v51  ;;  %1060 = vmatpush1.msra.mxu1 %v978_v23  ;;  %v1577_v49 = vld [vmem:[%s4724_s5 + $0xb0] sm:$0xff] }
 0x180   : > { %vm3586_vm9 = vmand %vm4948_vm2, %vm4947_vm13  ;;  %v4949_v22 = vmov 0  ;;  %v2214_v0 = vsel %vm3474_vm7, 1.0, %v4898_v55  ;;  %v975_v2 = vmul.f32 %v2218_v59, %v3123_v48  ;;  %vm4951_vm13 = vcmp.lt.s32.totalorder %v2879_v19, %v3314_v34  ;;  %1061 = vmatprep.subr.mxu1 %v976_v37 }
 0x181   : > { %v4950_v22 = vsel %vm3586_vm9, 4294967295, %v4949_v22  ;;  %vm4952_vm2 = vcmp.ge.s32.totalorder %v2879_v19, %v3334_v5  ;;  %v2209_v51 = vsel %vm3493_vm14, 1.0, %v4898_v55  ;;  %v973_v48 = vmul.f32 %v3070_v30, %v2216_v56  ;;  %2492 = vmatprep.subr.mxu0 %v977_v31  ;;  %v713_v56 = vpop.permute.xlu1 %712 }
 0x182   : > { %vm3604_vm3 = vmand %vm4952_vm2, %vm4951_vm13  ;;  %v974_v59 = vmul.f32 %v3070_v30, %v2217_v53  ;;  %vm4955_vm6 = vcmp.lt.s32.totalorder %v2990_v10, %v3314_v34  ;;  %vm4956_vm13 = vcmp.ge.s32.totalorder %v2990_v10, %v3334_v5  ;;  %v4957_v47 = vmov 0  ;;  %1062 = vmatpush1.msra.mxu1 %v975_v2  ;;  %2493 = vmatpush3.msra.mxu0 %v977_v31  ;;  %v1639_v2 = vld [vmem:[%s4724_s5 + $0x2a0] sm:$0xff] }
 0x183   : > { %vm3621_vm2 = vmand %vm4956_vm13, %vm4955_vm6  ;;  %v2210_v57 = vsel %vm3510_vm8, 1.0, %v4898_v55  ;;  %v972_v60 = vmul.f32 %v3070_v30, %v2215_v29  ;;  %vm4959_vm6 = vcmp.lt.s32.totalorder %v2983_v7, %v3314_v34  ;;  %vm4960_vm13 = vcmp.ge.s32.totalorder %v2983_v7, %v3334_v5  ;;  %1063 = vmatprep.subr.mxu1 %v973_v48  ;;  %v601_v5 = vpop.permute.xlu0 %600  ;;  %v1575_v34 = vld [vmem:[%s4724_s5 + $0xa0] sm:$0xff] }
 0x184   : > { %v4958_v47 = vsel %vm3621_vm2, 4294967295, %v4957_v47  ;;  %vm3639_vm7 = vmand %vm4960_vm13, %vm4959_vm6  ;;  %v4961_v1 = vmov 0  ;;  %v2211_v30 = vsel %vm3529_vm4, 1.0, %v4898_v55  ;;  %v970_v29 = vmul.f32 %v2213_v44, %v3087_v33  ;;  %2494 = vmatprep.subr.mxu0 %v974_v59 }
 0x185   : > { %v4962_v1 = vsel %vm3639_vm7, 4294967295, %v4961_v1  ;;  %v971_v6 = vmul.f32 %v2214_v0, %v3087_v33  ;;  %vm4963_vm6 = vcmp.lt.s32.totalorder %v2879_v19, %v3419_v63  ;;  %vm4964_vm13 = vcmp.ge.s32.totalorder %v2879_v19, %v3442_v38  ;;  %1064 = vmatpush1.msra.mxu1 %v972_v60  ;;  %2495 = vmatpush3.msra.mxu0 %v974_v59  ;;  %v1572_v59 = vld [vmem:[%s4724_s5 + $0x88] sm:$0xff] }
 0x186   : > { %vm3656_vm10 = vmand %vm4964_vm13, %vm4963_vm6  ;;  %v2206_v53 = vsel %vm3548_vm12, 1.0, %v4898_v55  ;;  %v969_v39 = vmul.f32 %v2212_v17, %v3087_v33  ;;  %vm4967_vm6 = vcmp.lt.s32.totalorder %v2990_v10, %v3419_v63  ;;  %vm4968_vm13 = vcmp.ge.s32.totalorder %v2990_v10, %v3442_v38  ;;  %1065 = vmatprep.subr.mxu1 %v970_v29 }
 0x187   : > { %vm3674_vm8 = vmand %vm4968_vm13, %vm4967_vm6  ;;  %v4969_v40 = vmov 0  ;;  %v967_v23 = vmul.f32 %v3024_v18, %v2210_v57  ;;  %v968_v44 = vmul.f32 %v3024_v18, %v2211_v30  ;;  %v2207_v33 = vsel %vm3569_vm0, 1.0, %v4898_v55  ;;  %2496 = vmatprep.subr.mxu0 %v971_v6 }
 0x188   : > { %v4970_v40 = vsel %vm3674_vm8, 4294967295, %v4969_v40  ;;  %vm4971_vm14 = vcmp.lt.s32.totalorder %v2983_v7, %v3419_v63  ;;  %vm4972_vm6 = vcmp.ge.s32.totalorder %v2983_v7, %v3442_v38  ;;  %v4973_v17 = vmov 0  ;;  %1066 = vmatpush1.msra.mxu1 %v969_v39  ;;  %2497 = vmatpush3.msra.mxu0 %v971_v6  ;;  %v1573_v63 = vld [vmem:[%s4724_s5 + $0x90] sm:$0xff] }
 0x189   : > { %vm3691_vm13 = vmand %vm4972_vm6, %vm4971_vm14  ;;  %v966_v37 = vmul.f32 %v3024_v18, %v2209_v51  ;;  %v2208_v31 = vsel %vm3586_vm9, 1.0, %v4898_v55  ;;  %vm4975_vm0 = vcmp.lt.s32.totalorder %v2879_v19, %v3535_v54  ;;  %vm4976_vm14 = vcmp.ge.s32.totalorder %v2879_v19, %v3556_v24  ;;  %1067 = vmatprep.subr.mxu1 %v967_v23  ;;  %2498 = vmatprep.subr.mxu0 %v968_v44 }
 0x18a   : > { %v4974_v17 = vsel %vm3691_vm13, 4294967295, %v4973_v17  ;;  %vm3707_vm6 = vmand %vm4976_vm14, %vm4975_vm0  ;;  %v2204_v18 = vsel %vm3621_vm2, 1.0, %v4898_v55  ;;  %v964_v38 = vmul.f32 %v2207_v33, %v3050_v25  ;;  %v965_v0 = vmul.f32 %v2208_v31, %v3050_v25  ;;  %2499 = vmatpush3.msra.mxu0 %v968_v44 }
 0x18b   : > { %vm4979_vm12 = vcmp.lt.s32.totalorder %v2990_v10, %v3535_v54  ;;  %vm4980_vm0 = vcmp.ge.s32.totalorder %v2990_v10, %v3556_v24  ;;  %v2205_v51 = vsel %vm3639_vm7, 1.0, %v4898_v55  ;;  %v963_v48 = vmul.f32 %v2206_v53, %v3050_v25  ;;  %1068 = vmatpush1.msra.mxu1 %v966_v37 }
 0x18c   : > { %vm3723_vm14 = vmand %vm4980_vm0, %vm4979_vm12  ;;  %vm4983_vm9 = vcmp.lt.s32.totalorder %v2983_v7, %v3535_v54  ;;  %vm4984_vm12 = vcmp.ge.s32.totalorder %v2983_v7, %v3556_v24  ;;  %v2203_v57 = vsel %vm3604_vm3, 1.0, %v4898_v55  ;;  %v961_v25 = vmul.f32 %v2998_v12, %v2204_v18  ;;  %1069 = vmatprep.subr.mxu1 %v964_v38  ;;  %2500 = vmatprep.subr.mxu0 %v965_v0  ;;  %v1638_v54 = vld [vmem:[%s4724_s5 + $0x298] sm:$0xff] }
 0x18d   : > { %vm3739_vm0 = vmand %vm4984_vm12, %vm4983_vm9  ;;  %v962_v60 = vmul.f32 %v2998_v12, %v2205_v51  ;;  %vm4987_vm4 = vcmp.lt.s32.totalorder %v2990_v10, %v713_v56  ;;  %vm4988_vm7 = vcmp.ge.s32.totalorder %v2990_v10, %v601_v5  ;;  %v960_v24 = vmul.f32 %v2998_v12, %v2203_v57  ;;  %1070 = vmatpush1.msra.mxu1 %v963_v48  ;;  %v5003_v51 = vld [vmem:[#allocation11_spill] sm:$0xff]  ;;  %v5005_v48 = vld [vmem:[#allocation12_spill] sm:$0xff] }
 0x18e   : > { %vm3753_vm9 = vmand %vm4988_vm7, %vm4987_vm4  ;;  %v2201_v30 = vsel %vm3674_vm8, 1.0, %v4898_v55  ;;  %v2202_v29 = vsel %vm3691_vm13, 1.0, %v4898_v55  ;;  %2501 = vmatpush3.msra.mxu0 %v965_v0  ;;  %vm4991_vm12 = vcmp.lt.s32.totalorder %v2983_v7, %v713_v56  ;;  %vm4992_vm2 = vcmp.ge.s32.totalorder %v2983_v7, %v601_v5  ;;  %1071 = vmatprep.subr.mxu1 %v961_v25  ;;  %v5012_v57 = vld [vmem:[#allocation15_spill] sm:$0xff]  ;;  %v5014_v25 = vld [vmem:[#allocation13_spill] sm:$0xff] }
 0x18f   : > { %vm3768_vm7 = vmand %vm4992_vm2, %vm4991_vm12  ;;  %v2200_v12 = vsel %vm3656_vm10, 1.0, %v4898_v55  ;;  %v958_v6 = vmul.f32 %v2201_v30, %v3010_v15  ;;  %v959_v53 = vmul.f32 %v2202_v29, %v3010_v15  ;;  %2502 = vmatprep.subr.mxu0 %v962_v60  ;;  %vm4995_vm4 = vcmp.lt.s32.totalorder %v2879_v19, %v713_v56  ;;  %1072 = vmatpush1.msra.mxu1 %v960_v24  ;;  %v5018_v24 = vld [vmem:[#allocation18_spill] sm:$0xff]  ;;  %v5020_v30 = vld [vmem:[#allocation16_spill] sm:$0xff] }
 0x190   : > { %vm4996_vm13 = vcmp.ge.s32.totalorder %v2879_v19, %v601_v5  ;;  %v2198_v39 = vsel %vm3723_vm14, 1.0, %v4898_v55  ;;  %v2199_v23 = vsel %vm3739_vm0, 1.0, %v4898_v55  ;;  %v957_v44 = vmul.f32 %v2200_v12, %v3010_v15  ;;  %2503 = vmatpush3.msra.mxu0 %v962_v60  ;;  %v5016_v60 = vld [vmem:[#allocation17_spill] sm:$0xff]  ;;  %v5022_v29 = vld [vmem:[#allocation3_spill] sm:$0xff]  ;;  %v5024_v12 = vld [vmem:[#allocation20_spill] sm:$0xff] }
 0x191   : > { %vm3781_vm8 = vmand %vm4996_vm13, %vm4995_vm4  ;;  %v2197_v19 = vsel %vm3707_vm6, 1.0, %v4898_v55  ;;  %v955_v56 = vmul.f32 %v2987_v9, %v2198_v39  ;;  %v956_v5 = vmul.f32 %v2987_v9, %v2199_v23  ;;  %1073 = vmatprep.subr.mxu1 %v958_v6  ;;  %2504 = vmatprep.subr.mxu0 %v959_v53  ;;  %v2195_v37 = vsel %vm3753_vm9, 1.0, %v4898_v55  ;;  %v5026_v6 = vld [vmem:[#allocation21_spill] sm:$0xff]  ;;  %v5031_v39 = vld [vmem:[#allocation22_spill] sm:$0xff] }
 0x192   : > { %v954_v33 = vmul.f32 %v2987_v9, %v2197_v19  ;;  %v2196_v15 = vsel %vm3768_vm7, 1.0, %v4898_v55  ;;  %1074 = vmatpush1.msra.mxu1 %v957_v44  ;;  %2505 = vmatpush3.msra.mxu0 %v959_v53  ;;  %v2194_v31 = vsel %vm3781_vm8, 1.0, %v4898_v55  ;;  %v952_v18 = vmul.f32 %v2195_v37, %v2992_v11  ;;  %v5028_v53 = vld [vmem:[#allocation19_spill] sm:$0xff]  ;;  %v5033_v23 = vld [vmem:[#allocation4_spill] sm:$0xff]  ;;  %v1571_v10 = vld [vmem:[%s4724_s5 + $0x80] sm:$0xff] }
 0x193   : > { %v953_v38 = vmul.f32 %v2196_v15, %v2992_v11  ;;  %1075 = vmatprep.subr.mxu1 %v955_v56  ;;  %2506 = vmatprep.subr.mxu0 %v956_v5  ;;  %v951_v9 = vmul.f32 %v2194_v31, %v2992_v11  ;;  %v4999_v0 = vmov 1.0   ;;  %vm5000_vm2 = vcmp.eq.s32.totalorder %v2919_v41, %v2924_v42  ;;  %v1637_v7 = vld [vmem:[%s4724_s5 + $0x290] sm:$0xff]  ;;  %v1570_v44 = vld [vmem:[%s4724_s5 + $0x78] sm:$0xff]  ;;  %v1636_v19 = vld [vmem:[%s4724_s5 + $0x288] sm:$0xff] }
 0x194   : > { %1076 = vmatpush1.msra.mxu1 %v954_v33  ;;  %2507 = vmatpush3.msra.mxu0 %v956_v5  ;;  %vm5001_vm13 = vcmp.eq.s32.totalorder %v2926_v43, %v2924_v42  ;;  %vm5004_vm12 = vnez %v5003_v51  ;;  %vm5006_vm4 = vnez %v5005_v48  ;;  %v1569_v56 = vld [vmem:[%s4724_s5 + $0x70] sm:$0xff]  ;;  %v1635_v5 = vld [vmem:[%s4724_s5 + $0x280] sm:$0xff]  ;;  %v1634_v33 = vld [vmem:[%s4724_s5 + $0x278] sm:$0xff] }
 0x195   : > { %1077 = vmatprep.subr.mxu1 %v952_v18  ;;  %2508 = vmatprep.subr.mxu0 %v953_v38  ;;  %v1567_v37 = vld [vmem:[%s4724_s5 + $0x60] sm:$0xff]  ;;  %v1633_v15 = vld [vmem:[%s4724_s5 + $0x270] sm:$0xff]  ;;  %v1566_v31 = vld [vmem:[%s4724_s5 + $0x58] sm:$0xff] }
 0x196   : > { %1078 = vmatpush1.msra.mxu1 %v951_v9  ;;  %2509 = vmatpush3.msra.mxu0 %v953_v38  ;;  %v1632_v18 = vld [vmem:[%s4724_s5 + $0x268] sm:$0xff]  ;;  %v1631_v38 = vld [vmem:[%s4724_s5 + $0x260] sm:$0xff]  ;;  %v1629_v51 = vld [vmem:[%s4724_s5 + $0x250] sm:$0xff] }
 0x197   : > { %2252 = vmatmul.mubr.msk.f32.vlgmr.msra.gmra.mxu1 %vm5000_vm2, %v4999_v0  ;;  %2511 = vmatmul.mubr.msk.f32.vlgmr.msra.gmra.mxu0 %vm5001_vm13, %v4999_v0  ;;  %vm5013_vm2 = vnez %v5012_v57  ;;  %v1564_v9 = vld [vmem:[%s4724_s5 + $0x48] sm:$0xff]  ;;  %v1563_v11 = vld [vmem:[%s4724_s5 + $0x40] sm:$0xff]  ;;  %v1562_v48 = vld [vmem:[%s4724_s5 + $0x38] sm:$0xff] }
 0x198   : > { %2268 = vmatprep.subr.msk.mxu1 %vm4863_vm15, %v4999_v0  ;;  %2522 = vmatprep.subr.msk.mxu0 %vm3012_vm5, %v4999_v0  ;;  %vm5008_vm15 = vnez %v5007_v20  ;;  %v1628_v20 = vld [vmem:[%s4724_s5 + $0x248] sm:$0xff]  ;;  %v1627_v57 = vld [vmem:[%s4724_s5 + $0x240] sm:$0xff] }
 0x199   : > { %2269 = vmatpush1.msk.msra.mxu1 %vm3034_vm11, %v4999_v0  ;;  %2523 = vmatpush3.msk.msra.mxu0 %vm3012_vm5, %v4999_v0  ;;  %vm5009_vm5 = vmmov %vm5001_vm13  ;;  %vm5011_vm11 = vnez %v5010_v16  ;;  %vm5015_vm13 = vnez %v5014_v25  ;;  %v1561_v16 = vld [vmem:[%s4724_s5 + $0x30] sm:$0xff]  ;;  %v1560_v25 = vld [vmem:[%s4724_s5 + $0x28] sm:$0xff] }
 0x19a   : > { %2270 = vmatprep.subr.msk.mxu1 %vm5004_vm12, %v4999_v0  ;;  %2524 = vmatprep.subr.msk.mxu0 %vm5006_vm4, %v4999_v0  ;;  %vm5017_vm12 = vnez %v5016_v60  ;;  %v1626_v60 = vld [vmem:[%s4724_s5 + $0x238] sm:$0xff] }
 0x19b   : > { %1117 = vmatprep.mubr.f32.mxu1 %v4898_v55  ;;  %2271 = vmatpush1.msk.msra.mxu1 %vm5008_vm15, %v4999_v0  ;;  %vm5021_vm15 = vnez %v5020_v30  ;;  %v1625_v30 = vld [vmem:[%s4724_s5 + $0x230] sm:$0xff] }
 0x19c   : > { %2525 = vmatpush3.msk.msra.mxu0 %vm5006_vm4, %v4999_v0  ;;  %2253 = vmatmul.mubr.msk.f32.gmra.mxu1 %vm5009_vm5, %v4999_v0  ;;  %vm5019_vm4 = vnez %v5018_v24  ;;  %vm5023_vm5 = vcmp.eq.s32.totalorder %v5022_v29, %v2924_v42  ;;  %v1559_v24 = vld [vmem:[%s4724_s5 + $0x20] sm:$0xff] }
 0x19d   : > { %2272 = vmatprep.subr.msk.mxu1 %vm5011_vm11, %v4999_v0  ;;  %2526 = vmatprep.subr.msk.mxu0 %vm5013_vm2, %v4999_v0  ;;  %vm5025_vm11 = vnez %v5024_v12  ;;  %v1624_v12 = vld [vmem:[%s4724_s5 + $0x228] sm:$0xff] }
 0x19e   : > { %2273 = vmatpush1.msk.msra.mxu1 %vm5015_vm13, %v4999_v0  ;;  %2527 = vmatpush3.msk.msra.mxu0 %vm5013_vm2, %v4999_v0  ;;  %vm5027_vm2 = vnez %v5026_v6  ;;  %vm5029_vm13 = vnez %v5028_v53  ;;  %v1557_v6 = vld [vmem:[%s4724_s5 + $0x10] sm:$0xff]  ;;  %v1623_v53 = vld [vmem:[%s4724_s5 + $0x220] sm:$0xff] }
 0x19f   : > { %2274 = vmatprep.subr.msk.mxu1 %vm5017_vm12, %v4999_v0  ;;  %2528 = vmatprep.subr.msk.mxu0 %vm5019_vm4, %v4999_v0  ;;  %vm5030_vm12 = vnez %v4873_v36  ;;  %v5041_v36 = vld [vmem:[#allocation5_spill] sm:$0xff] }
 0x1a0   : > { %1123 = vmatprep.mubr.f32.mxu1 %v4898_v55  ;;  %2275 = vmatpush1.msk.msra.mxu1 %vm5021_vm15, %v4999_v0  ;;  %vm5034_vm15 = vcmp.eq.s32.totalorder %v5033_v23, %v2924_v42 }
 0x1a1   : > { %2529 = vmatpush3.msk.msra.mxu0 %vm5019_vm4, %v4999_v0  ;;  %2254 = vmatmul.mubr.msk.f32.gmra.mxu1 %vm5023_vm5, %v4999_v0  ;;  %vm5032_vm4 = vnez %v5031_v39  ;;  %vm5035_vm5 = vnez %v4885_v45  ;;  %v5051_v45 = vld [vmem:[#allocation6_spill] sm:$0xff]  ;;  %v1556_v39 = vld [vmem:[%s4724_s5 + $0x8] sm:$0xff] }
 0x1a2   : > { %2276 = vmatprep.subr.msk.mxu1 %vm5025_vm11, %v4999_v0  ;;  %2530 = vmatprep.subr.msk.mxu0 %vm5027_vm2, %v4999_v0  ;;  %vm5036_vm11 = vnez %v4889_v35  ;;  %v5068_v35 = vld [vmem:[#allocation8_spill] sm:$0xff] }
 0x1a3   : > { %2277 = vmatpush1.msk.msra.mxu1 %vm5029_vm13, %v4999_v0  ;;  %2531 = vmatpush3.msk.msra.mxu0 %vm5027_vm2, %v4999_v0  ;;  %vm5037_vm2 = vnez %v4881_v3  ;;  %vm5039_vm13 = vnez %v4902_v21  ;;  %v5061_v21 = vld [vmem:[#allocation7_spill] sm:$0xff]  ;;  %v1650_v3 = vld [vmem:[%s4724_s5 + $0x2f8] sm:$0xff] }
 0x1a4   : > { %2278 = vmatprep.subr.msk.mxu1 %vm5030_vm12, %v4999_v0  ;;  %2532 = vmatprep.subr.msk.mxu0 %vm3252_vm1, %v4999_v0  ;;  %vm5040_vm12 = vnez %v4893_v4  ;;  %v1585_v4 = vld [vmem:[%s4724_s5 + $0xf0] sm:$0xff] }
 0x1a5   : > { %1129 = vmatprep.mubr.f32.mxu1 %v4898_v55  ;;  %2279 = vmatpush1.msk.msra.mxu1 %vm5032_vm4, %v4999_v0  ;;  %vm5042_vm4 = vcmp.eq.s32.totalorder %v5041_v36, %v2924_v42 }
 0x1a6   : > { %2533 = vmatpush3.msk.msra.mxu0 %vm3252_vm1, %v4999_v0  ;;  %2255 = vmatmul.mubr.msk.f32.gmra.mxu1 %vm5034_vm15, %v4999_v0  ;;  %vm5038_vm1 = vnez %v4897_v50  ;;  %vm5043_vm15 = vnez %v4910_v52  ;;  %v1649_v50 = vld [vmem:[%s4724_s5 + $0x2f0] sm:$0xff]  ;;  %v1583_v52 = vld [vmem:[%s4724_s5 + $0xe0] sm:$0xff] }
 0x1a7   : > { %2280 = vmatprep.subr.msk.mxu1 %vm5035_vm5, %v4999_v0  ;;  %2534 = vmatprep.subr.msk.mxu0 %vm5036_vm11, %v4999_v0  ;;  %vm5044_vm5 = vnez %v4914_v62  ;;  %v1647_v62 = vld [vmem:[%s4724_s5 + $0x2e0] sm:$0xff] }
 0x1a8   : > { %2281 = vmatpush1.msk.msra.mxu1 %vm5037_vm2, %v4999_v0  ;;  %2535 = vmatpush3.msk.msra.mxu0 %vm5036_vm11, %v4999_v0  ;;  %vm5045_vm11 = vnez %v4906_v8  ;;  %vm5046_vm2 = vcmp.eq.s32.totalorder %v5022_v29, %v2924_v42  ;;  %v1648_v8 = vld [vmem:[%s4724_s5 + $0x2e8] sm:$0xff] }
 0x1a9   : > { %2282 = vmatprep.subr.msk.mxu1 %vm5038_vm1, %v4999_v0  ;;  %2536 = vmatprep.subr.msk.mxu0 %vm5039_vm13, %v4999_v0  ;;  %vm5047_vm1 = vnez %v4922_v61  ;;  %v1581_v61 = vld [vmem:[%s4724_s5 + $0xd0] sm:$0xff] }
 0x1aa   : > { %1135 = vmatprep.mubr.f32.mxu1 %v4898_v55  ;;  %2283 = vmatpush1.msk.msra.mxu1 %vm5040_vm12, %v4999_v0  ;;  %vm5049_vm12 = vcmp.eq.s32.totalorder %v5033_v23, %v2924_v42 }
 0x1ab   : > { %2537 = vmatpush3.msk.msra.mxu0 %vm5039_vm13, %v4999_v0  ;;  %2256 = vmatmul.mubr.msk.f32.gmra.mxu1 %vm5042_vm4, %v4999_v0  ;;  %vm5048_vm13 = vnez %v4926_v32  ;;  %vm5050_vm4 = vnez %v4918_v14  ;;  %v1646_v14 = vld [vmem:[%s4724_s5 + $0x2d8] sm:$0xff]  ;;  %v1645_v32 = vld [vmem:[%s4724_s5 + $0x2d0] sm:$0xff] }
 0x1ac   : > { %2284 = vmatprep.subr.msk.mxu1 %vm5043_vm15, %v4999_v0  ;;  %2538 = vmatprep.subr.msk.mxu0 %vm5044_vm5, %v4999_v0  ;;  %vm5052_vm15 = vcmp.eq.s32.totalorder %v5051_v45, %v2924_v42 }
 0x1ad   : > { %2285 = vmatpush1.msk.msra.mxu1 %vm5045_vm11, %v4999_v0  ;;  %2539 = vmatpush3.msk.msra.mxu0 %vm5044_vm5, %v4999_v0  ;;  %vm5053_vm5 = vnez %v4934_v26  ;;  %vm5054_vm11 = vnez %v4938_v28  ;;  %v1579_v26 = vld [vmem:[%s4724_s5 + $0xc0] sm:$0xff]  ;;  %v1644_v28 = vld [vmem:[%s4724_s5 + $0x2c8] sm:$0xff] }
 0x1ae   : > { %2513 = vmatprep.mubr.msk.f32.mxu0 %vm5046_vm2, %v4999_v0  ;;  %2286 = vmatprep.subr.msk.mxu1 %vm5047_vm1, %v4999_v0  ;;  %vm5055_vm2 = vnez %v4930_v27  ;;  %vm5056_vm1 = vcmp.eq.s32.totalorder %v5041_v36, %v2924_v42  ;;  %v1580_v27 = vld [vmem:[%s4724_s5 + $0xc8] sm:$0xff] }
 0x1af   : > { %2540 = vmatprep.subr.msk.mxu0 %vm5048_vm13, %v4999_v0  ;;  %1141 = vmatprep.mubr.f32.mxu1 %v4898_v55 }
 0x1b0   : > { %2514 = vmatmul.mubr.msk.f32.gmra.mxu0 %vm5049_vm12, %v4999_v0  ;;  %2287 = vmatpush1.msk.msra.mxu1 %vm5050_vm4, %v4999_v0  ;;  %vm5058_vm12 = vnez %v4950_v22  ;;  %vm5059_vm4 = vmmov %vm5052_vm15  ;;  %v1642_v22 = vld [vmem:[%s4724_s5 + $0x2b8] sm:$0xff] }
 0x1b1   : > { %2541 = vmatpush3.msk.msra.mxu0 %vm5048_vm13, %v4999_v0  ;;  %2257 = vmatmul.mubr.msk.f32.gmra.mxu1 %vm5052_vm15, %v4999_v0  ;;  %vm5057_vm13 = vnez %v4946_v13  ;;  %vm5060_vm15 = vnez %v4942_v46  ;;  %v1578_v46 = vld [vmem:[%s4724_s5 + $0xb8] sm:$0xff]  ;;  %v1643_v13 = vld [vmem:[%s4724_s5 + $0x2c0] sm:$0xff] }
 0x1b2   : > { %2288 = vmatprep.subr.msk.mxu1 %vm5053_vm5, %v4999_v0  ;;  %2542 = vmatprep.subr.msk.mxu0 %vm5054_vm11, %v4999_v0  ;;  %vm5062_vm5 = vcmp.eq.s32.totalorder %v5061_v21, %v2924_v42  ;;  %v1618_v21 = vld [vmem:[%s4724_s5 + $0x1f8] sm:$0xff] }
 0x1b3   : > { %2289 = vmatpush1.msk.msra.mxu1 %vm5055_vm2, %v4999_v0  ;;  %2543 = vmatpush3.msk.msra.mxu0 %vm5054_vm11, %v4999_v0  ;;  %vm5063_vm11 = vnez %v4958_v47  ;;  %vm5064_vm2 = vnez %v4962_v1  ;;  %v1576_v47 = vld [vmem:[%s4724_s5 + $0xa8] sm:$0xff]  ;;  %v1641_v1 = vld [vmem:[%s4724_s5 + $0x2b0] sm:$0xff] }
 0x1b4   : > { %2516 = vmatprep.mubr.msk.f32.mxu0 %vm5056_vm1, %v4999_v0  ;;  %2290 = vmatprep.subr.msk.mxu1 %vm5057_vm13, %v4999_v0  ;;  %vm5065_vm1 = vmmov %vm5062_vm5  ;;  %vm5066_vm13 = vnez %v4970_v40  ;;  %v1574_v40 = vld [vmem:[%s4724_s5 + $0x98] sm:$0xff] }
 0x1b5   : > { %2544 = vmatprep.subr.msk.mxu0 %vm5058_vm12, %v4999_v0  ;;  %1147 = vmatprep.mubr.f32.mxu1 %v4898_v55 }
 0x1b6   : > { %2517 = vmatmul.mubr.msk.f32.gmra.mxu0 %vm5059_vm4, %v4999_v0  ;;  %2291 = vmatpush1.msk.msra.mxu1 %vm5060_vm15, %v4999_v0 }
 0x1b7   : > { %2545 = vmatpush3.msk.msra.mxu0 %vm5058_vm12, %v4999_v0  ;;  %2258 = vmatmul.mubr.msk.f32.gmra.mxu1 %vm5062_vm5, %v4999_v0  ;;  %vm5067_vm12 = vnez %v4974_v17  ;;  %vm5079_vm5 = vcmp.eq.s32.totalorder %v5051_v45, %v2924_v42  ;;  %v1640_v17 = vld [vmem:[%s4724_s5 + $0x2a8] sm:$0xff]  ;;  %v1621_v45 = vld [vmem:[%s4724_s5 + $0x210] sm:$0xff] }
 0x1b8   : > { %2292 = vmatprep.subr.msk.mxu1 %vm5063_vm11, %v4999_v0  ;;  %2546 = vmatprep.subr.msk.mxu0 %vm5064_vm2, %v4999_v0  ;;  %vm5080_vm11 = vmmov %vm5065_vm1 }
 0x1b9   : > { %2293 = vmatpush1.msk.msra.mxu1 %vm3604_vm3, %v4999_v0  ;;  %2547 = vmatpush3.msk.msra.mxu0 %vm5064_vm2, %v4999_v0  ;;  %vm5069_vm3 = vcmp.eq.s32.totalorder %v5068_v35, %v2924_v42  ;;  %v1620_v35 = vld [vmem:[%s4724_s5 + $0x208] sm:$0xff] }
 0x1ba   : > { %2519 = vmatprep.mubr.msk.f32.mxu0 %vm5065_vm1, %v4999_v0  ;;  %2294 = vmatprep.subr.msk.mxu1 %vm5066_vm13, %v4999_v0  ;;  %vm5070_vm4 = vmmov %vm5069_vm3 }
 0x1bb   : > { %2548 = vmatprep.subr.msk.mxu0 %vm5067_vm12, %v4999_v0  ;;  %1153 = vmatprep.mubr.f32.mxu1 %v4898_v55  ;;  %vm5082_vm1 = vmmov %vm5069_vm3 }
 0x1bc   : > { %2520 = vmatmul.mubr.msk.f32.gmra.mxu0 %vm5069_vm3, %v4999_v0  ;;  %2295 = vmatpush1.msk.msra.mxu1 %vm3656_vm10, %v4999_v0  ;;  %vm5071_vm10 = vcmp.eq.s32.totalorder %v2919_v41, %v2924_v42  ;;  %v1584_v41 = vld [vmem:[%s4724_s5 + $0xe8] sm:$0xff]  ;;  %vm5085_vm3 = vmmov %vm5080_vm11 }
 0x1bd   : > { %2549 = vmatpush3.msk.msra.mxu0 %vm5067_vm12, %v4999_v0  ;;  %2259 = vmatmul.mubr.msk.f32.gmra.mxu1 %vm5070_vm4, %v4999_v0  ;;  %vm5084_vm12 = vmmov %vm5079_vm5 }
 0x1be   : > { %2296 = vmatprep.subr.msk.mxu1 %vm3723_vm14, %v4999_v0  ;;  %2550 = vmatprep.subr.msk.mxu0 %vm3739_vm0, %v4999_v0  ;;  %vm5074_vm14 = vcmp.eq.s32.totalorder %v5022_v29, %v2924_v42  ;;  %vm5086_vm4 = vmmov %vm5082_vm1  ;;  %v1558_v29 = vld [vmem:[%s4724_s5 + $0x18] sm:$0xff] }
 0x1bf   : > { %2297 = vmatpush1.msk.msra.mxu1 %vm3707_vm6, %v4999_v0  ;;  %2551 = vmatpush3.msk.msra.mxu0 %vm3739_vm0, %v4999_v0  ;;  %vm5073_vm6 = vcmp.eq.s32.totalorder %v2926_v43, %v2924_v42  ;;  %v1582_v43 = vld [vmem:[%s4724_s5 + $0xd8] sm:$0xff]  ;;  %vm5078_vm15 = vmmov %vm5074_vm14 }
 0x1c0   : > { %2298 = vmatprep.subr.msk.mxu1 %vm3753_vm9, %v4999_v0  ;;  %2552 = vmatprep.subr.msk.mxu0 %vm3768_vm7, %v4999_v0  ;;  %vm5075_vm0 = vmmov %vm5073_vm6  ;;  %vm5076_vm9 = vcmp.eq.s32.totalorder %v5033_v23, %v2924_v42  ;;  %v1622_v23 = vld [vmem:[%s4724_s5 + $0x218] sm:$0xff] }
 0x1c1   : > { %2299 = vmatpush1.msk.msra.mxu1 %vm3781_vm8, %v4999_v0  ;;  %1329 = vmatprep.mubr.f32.mxu1 %v4898_v55  ;;  %vm5072_vm8 = vmmov %vm5071_vm10 }
 0x1c2   : > { %2553 = vmatpush3.msk.msra.mxu0 %vm3768_vm7, %v4999_v0  ;;  %2554 = vmatprep.mubr.msk.f32.mxu0 %vm5071_vm10, %v4999_v0  ;;  %vm5077_vm7 = vcmp.eq.s32.totalorder %v5041_v36, %v2924_v42  ;;  %vm5081_vm2 = vmmov %vm5076_vm9  ;;  %v1565_v42 = vld [vmem:[%s4724_s5 + $0x50] sm:$0xff]  ;;  %v1555_v36 = vld [vmem:[%s4724_s5] sm:$0xff] }
 0x1c3   : > { %2300 = vmatmul.mubr.msk.f32.vlgmr.msra.gmra.mxu1 %vm5072_vm8, %v4999_v0  ;;  %2555 = vmatmul.mubr.msk.f32.vlgmr.msra.gmra.mxu0 %vm5073_vm6, %v4999_v0  ;;  %vm5083_vm13 = vmmov %vm5077_vm7 }
 0x1c4   : > { %1335 = vmatprep.mubr.f32.mxu1 %v4898_v55  ;;  %2557 = vmatprep.mubr.msk.f32.mxu0 %vm5074_vm14, %v4999_v0 }
 0x1c5   : > { %1695 = vmatprep.subr.mxu1 %v1586_v58  ;;  %1808 = vmatprep.subr.mxu0 %v1650_v3  ;;  %v1617_v58 = vld [vmem:[%s4724_s5 + $0x1f0] sm:$0xff]  ;;  %v1619_v3 = vld [vmem:[%s4724_s5 + $0x200] sm:$0xff] }
 0x1c6   : > { %1696 = vmatpush1.msra.mxu1 %v1585_v4  ;;  %1809 = vmatpush1.msra.mxu0 %v1649_v50  ;;  %v1616_v4 = vld [vmem:[%s4724_s5 + $0x1e8] sm:$0xff]  ;;  %v1682_v50 = vld [vmem:[%s4724_s5 + $0x3f8] sm:$0xff] }
 0x1c7   : > { %2301 = vmatmul.mubr.msk.f32.gmra.mxu1 %vm5075_vm0, %v4999_v0  ;;  %2558 = vmatmul.mubr.msk.f32.gmra.mxu0 %vm5076_vm9, %v4999_v0 }
 0x1c8   : > { %1341 = vmatprep.mubr.f32.mxu1 %v4898_v55  ;;  %2560 = vmatprep.mubr.msk.f32.mxu0 %vm5077_vm7, %v4999_v0 }
 0x1c9   : > { %1697 = vmatprep.subr.mxu1 %v1584_v41  ;;  %1810 = vmatprep.subr.mxu0 %v1648_v8  ;;  %v1615_v41 = vld [vmem:[%s4724_s5 + $0x1e0] sm:$0xff]  ;;  %v1681_v8 = vld [vmem:[%s4724_s5 + $0x3f0] sm:$0xff] }
 0x1ca   : > { %1698 = vmatpush1.msra.mxu1 %v1583_v52  ;;  %1811 = vmatpush1.msra.mxu0 %v1647_v62  ;;  %v1614_v52 = vld [vmem:[%s4724_s5 + $0x1d8] sm:$0xff]  ;;  %v1680_v62 = vld [vmem:[%s4724_s5 + $0x3e8] sm:$0xff] }
 0x1cb   : > { %2302 = vmatmul.mubr.msk.f32.gmra.mxu1 %vm5078_vm15, %v4999_v0  ;;  %2561 = vmatmul.mubr.msk.f32.gmra.mxu0 %vm5079_vm5, %v4999_v0 }
 0x1cc   : > { %1347 = vmatprep.mubr.f32.mxu1 %v4898_v55  ;;  %2563 = vmatprep.mubr.msk.f32.mxu0 %vm5080_vm11, %v4999_v0 }
 0x1cd   : > { %1699 = vmatprep.subr.mxu1 %v1582_v43  ;;  %1812 = vmatprep.subr.mxu0 %v1646_v14  ;;  %v1613_v43 = vld [vmem:[%s4724_s5 + $0x1d0] sm:$0xff]  ;;  %v1679_v14 = vld [vmem:[%s4724_s5 + $0x3e0] sm:$0xff] }
 0x1ce   : > { %1700 = vmatpush1.msra.mxu1 %v1581_v61  ;;  %1813 = vmatpush1.msra.mxu0 %v1645_v32  ;;  %v1612_v61 = vld [vmem:[%s4724_s5 + $0x1c8] sm:$0xff]  ;;  %v1678_v32 = vld [vmem:[%s4724_s5 + $0x3d8] sm:$0xff] }
 0x1cf   : > { %2303 = vmatmul.mubr.msk.f32.gmra.mxu1 %vm5081_vm2, %v4999_v0  ;;  %2564 = vmatmul.mubr.msk.f32.gmra.mxu0 %vm5082_vm1, %v4999_v0 }
 0x1d0   : > { %1353 = vmatprep.mubr.f32.mxu1 %v4898_v55  ;;  %1701 = vmatprep.subr.mxu1 %v1580_v27  ;;  %v1611_v27 = vld [vmem:[%s4724_s5 + $0x1c0] sm:$0xff] }
 0x1d1   : > { %1702 = vmatpush1.msra.mxu1 %v1579_v26  ;;  %1814 = vmatprep.subr.mxu0 %v1644_v28  ;;  %v1677_v26 = vld [vmem:[%s4724_s5 + $0x3d0] sm:$0xff]  ;;  %v1610_v28 = vld [vmem:[%s4724_s5 + $0x1b8] sm:$0xff] }
 0x1d2   : > { %1703 = vmatprep.subr.mxu1 %v1578_v46  ;;  %1815 = vmatpush1.msra.mxu0 %v1643_v13  ;;  %v1676_v46 = vld [vmem:[%s4724_s5 + $0x3c8] sm:$0xff]  ;;  %v1609_v13 = vld [vmem:[%s4724_s5 + $0x1b0] sm:$0xff] }
 0x1d3   : > { %2304 = vmatmul.mubr.msk.f32.gmra.mxu1 %vm5083_vm13, %v4999_v0  ;;  %1816 = vmatprep.subr.mxu0 %v1642_v22  ;;  %v1675_v22 = vld [vmem:[%s4724_s5 + $0x3c0] sm:$0xff] }
 0x1d4   : > { %1359 = vmatprep.mubr.f32.mxu1 %v4898_v55  ;;  %1704 = vmatpush1.msra.mxu1 %v1577_v49  ;;  %v1608_v49 = vld [vmem:[%s4724_s5 + $0x1a8] sm:$0xff] }
 0x1d5   : > { %1705 = vmatprep.subr.mxu1 %v1576_v47  ;;  %1817 = vmatpush1.msra.mxu0 %v1641_v1  ;;  %v1674_v47 = vld [vmem:[%s4724_s5 + $0x3b8] sm:$0xff]  ;;  %v1607_v1 = vld [vmem:[%s4724_s5 + $0x1a0] sm:$0xff] }
 0x1d6   : > { %1706 = vmatpush1.msra.mxu1 %v1575_v34  ;;  %1818 = vmatprep.subr.mxu0 %v1640_v17  ;;  %v1673_v34 = vld [vmem:[%s4724_s5 + $0x3b0] sm:$0xff]  ;;  %v1672_v17 = vld [vmem:[%s4724_s5 + $0x3a8] sm:$0xff] }
 0x1d7   : > { %2305 = vmatmul.mubr.msk.f32.gmra.mxu1 %vm5084_vm12, %v4999_v0  ;;  %1707 = vmatprep.subr.mxu1 %v1574_v40  ;;  %v1606_v40 = vld [vmem:[%s4724_s5 + $0x198] sm:$0xff] }
 0x1d8   : > { %1365 = vmatprep.mubr.f32.mxu1 %v4898_v55  ;;  %1708 = vmatpush1.msra.mxu1 %v1573_v63  ;;  %v1605_v63 = vld [vmem:[%s4724_s5 + $0x190] sm:$0xff] }
 0x1d9   : > { %1819 = vmatpush1.msra.mxu0 %v1639_v2  ;;  %1709 = vmatprep.subr.mxu1 %v1572_v59  ;;  %v1671_v2 = vld [vmem:[%s4724_s5 + $0x3a0] sm:$0xff]  ;;  %v1604_v59 = vld [vmem:[%s4724_s5 + $0x188] sm:$0xff] }
 0x1da   : > { %1820 = vmatprep.subr.mxu0 %v1638_v54  ;;  %1710 = vmatpush1.msra.mxu1 %v1571_v10  ;;  %v1670_v54 = vld [vmem:[%s4724_s5 + $0x398] sm:$0xff]  ;;  %v1603_v10 = vld [vmem:[%s4724_s5 + $0x180] sm:$0xff] }
 0x1db   : > { %2306 = vmatmul.mubr.msk.f32.gmra.mxu1 %vm5085_vm3, %v4999_v0  ;;  %1821 = vmatpush1.msra.mxu0 %v1637_v7  ;;  %v1669_v7 = vld [vmem:[%s4724_s5 + $0x390] sm:$0xff] }
 0x1dc   : > { %1371 = vmatprep.mubr.f32.mxu1 %v4898_v55  ;;  %1711 = vmatprep.subr.mxu1 %v1570_v44  ;;  %v1568_v55 = vld [vmem:[%s4724_s5 + $0x68] sm:$0xff]  ;;  %v1602_v44 = vld [vmem:[%s4724_s5 + $0x178] sm:$0xff] }
 0x1dd   : > { %1822 = vmatprep.subr.mxu0 %v1636_v19  ;;  %1712 = vmatpush1.msra.mxu1 %v1569_v56  ;;  %v1668_v19 = vld [vmem:[%s4724_s5 + $0x388] sm:$0xff]  ;;  %v1601_v56 = vld [vmem:[%s4724_s5 + $0x170] sm:$0xff] }
 0x1de   : > { %1823 = vmatpush1.msra.mxu0 %v1635_v5  ;;  %1713 = vmatprep.subr.mxu1 %v1568_v55  ;;  %v1667_v5 = vld [vmem:[%s4724_s5 + $0x380] sm:$0xff]  ;;  %v1600_v55 = vld [vmem:[%s4724_s5 + $0x168] sm:$0xff] }
 0x1df   : > { %2307 = vmatmul.mubr.msk.f32.gmra.mxu1 %vm5086_vm4, %v4999_v0  ;;  %1824 = vmatprep.subr.mxu0 %v1634_v33  ;;  %v1630_v0 = vld [vmem:[%s4724_s5 + $0x258] sm:$0xff] }
 0x1e0   : > { %1714 = vmatpush1.msra.mxu1 %v1567_v37  ;;  %1825 = vmatpush1.msra.mxu0 %v1633_v15  ;;  %v1666_v33 = vld [vmem:[%s4724_s5 + $0x378] sm:$0xff]  ;;  %v1599_v37 = vld [vmem:[%s4724_s5 + $0x160] sm:$0xff]  ;;  %v1665_v15 = vld [vmem:[%s4724_s5 + $0x370] sm:$0xff] }
 0x1e1   : > { %1715 = vmatprep.subr.mxu1 %v1566_v31  ;;  %1826 = vmatprep.subr.mxu0 %v1632_v18  ;;  %v1598_v31 = vld [vmem:[%s4724_s5 + $0x158] sm:$0xff]  ;;  %v1664_v18 = vld [vmem:[%s4724_s5 + $0x368] sm:$0xff] }
 0x1e2   : > { %1716 = vmatpush1.msra.mxu1 %v1565_v42  ;;  %1827 = vmatpush1.msra.mxu0 %v1631_v38  ;;  %v1597_v42 = vld [vmem:[%s4724_s5 + $0x150] sm:$0xff]  ;;  %v1663_v38 = vld [vmem:[%s4724_s5 + $0x360] sm:$0xff] }
 0x1e3   : > { %1717 = vmatprep.subr.mxu1 %v1564_v9  ;;  %1828 = vmatprep.subr.mxu0 %v1630_v0  ;;  %v1596_v9 = vld [vmem:[%s4724_s5 + $0x148] sm:$0xff]  ;;  %v1662_v0 = vld [vmem:[%s4724_s5 + $0x358] sm:$0xff] }
 0x1e4   : > { %1718 = vmatpush1.msra.mxu1 %v1563_v11  ;;  %1829 = vmatpush1.msra.mxu0 %v1629_v51  ;;  %v1595_v11 = vld [vmem:[%s4724_s5 + $0x140] sm:$0xff]  ;;  %v1661_v51 = vld [vmem:[%s4724_s5 + $0x350] sm:$0xff] }
 0x1e5   : > { %1719 = vmatprep.subr.mxu1 %v1562_v48  ;;  %1830 = vmatprep.subr.mxu0 %v1628_v20  ;;  %v1594_v48 = vld [vmem:[%s4724_s5 + $0x138] sm:$0xff]  ;;  %v1660_v20 = vld [vmem:[%s4724_s5 + $0x348] sm:$0xff] }
 0x1e6   : > { %1720 = vmatpush1.msra.mxu1 %v1561_v16  ;;  %1831 = vmatpush1.msra.mxu0 %v1627_v57  ;;  %v1593_v16 = vld [vmem:[%s4724_s5 + $0x130] sm:$0xff]  ;;  %v1659_v57 = vld [vmem:[%s4724_s5 + $0x340] sm:$0xff] }
 0x1e7   : > { %1721 = vmatprep.subr.mxu1 %v1560_v25  ;;  %1832 = vmatprep.subr.mxu0 %v1626_v60  ;;  %v1592_v25 = vld [vmem:[%s4724_s5 + $0x128] sm:$0xff]  ;;  %v1658_v60 = vld [vmem:[%s4724_s5 + $0x338] sm:$0xff] }
 0x1e8   : > { %1722 = vmatpush1.msra.mxu1 %v1559_v24  ;;  %1833 = vmatpush1.msra.mxu0 %v1625_v30  ;;  %v1591_v24 = vld [vmem:[%s4724_s5 + $0x120] sm:$0xff]  ;;  %v1657_v30 = vld [vmem:[%s4724_s5 + $0x330] sm:$0xff] }
 0x1e9   : > { %1723 = vmatprep.subr.mxu1 %v1558_v29  ;;  %1834 = vmatprep.subr.mxu0 %v1624_v12  ;;  %v1590_v29 = vld [vmem:[%s4724_s5 + $0x118] sm:$0xff]  ;;  %v1656_v12 = vld [vmem:[%s4724_s5 + $0x328] sm:$0xff] }
 0x1ea   : > { %1724 = vmatpush1.msra.mxu1 %v1557_v6  ;;  %1835 = vmatpush1.msra.mxu0 %v1623_v53  ;;  %v1589_v6 = vld [vmem:[%s4724_s5 + $0x110] sm:$0xff]  ;;  %v1655_v53 = vld [vmem:[%s4724_s5 + $0x320] sm:$0xff] }
 0x1eb   : > { %1725 = vmatprep.subr.mxu1 %v1556_v39  ;;  %1836 = vmatprep.subr.mxu0 %v1622_v23  ;;  %v1588_v39 = vld [vmem:[%s4724_s5 + $0x108] sm:$0xff]  ;;  %v1654_v23 = vld [vmem:[%s4724_s5 + $0x318] sm:$0xff] }
 0x1ec   : > { %1726 = vmatpush1.msra.mxu1 %v1555_v36  ;;  %1837 = vmatpush1.msra.mxu0 %v1621_v45  ;;  %v1587_v36 = vld [vmem:[%s4724_s5 + $0x100] sm:$0xff]  ;;  %v1653_v45 = vld [vmem:[%s4724_s5 + $0x310] sm:$0xff] }
 0x1ed   : > { %1727 = vmatprep.subr.mxu1 %v1618_v21  ;;  %1838 = vmatprep.subr.mxu0 %v1620_v35  ;;  %v1652_v21 = vld [vmem:[%s4724_s5 + $0x308] sm:$0xff]  ;;  %v1651_v35 = vld [vmem:[%s4724_s5 + $0x300] sm:$0xff] }
 0x1ee   : > { %1728 = vmatpush2.msra.mxu1 %v1617_v58  ;;  %1839 = vmatpush1.msra.mxu0 %v1619_v3 }
 0x1ef   : > { %1729 = vmatprep.subr.mxu1 %v1616_v4  ;;  %1840 = vmatprep.subr.mxu0 %v1682_v50 }
 0x1f0   : > { %1730 = vmatpush2.msra.mxu1 %v1615_v41  ;;  %1841 = vmatpush2.msra.mxu0 %v1681_v8 }
 0x1f1   : > { %1731 = vmatprep.subr.mxu1 %v1614_v52  ;;  %1842 = vmatprep.subr.mxu0 %v1680_v62 }
 0x1f2   : > { %1732 = vmatpush2.msra.mxu1 %v1613_v43  ;;  %1843 = vmatpush2.msra.mxu0 %v1679_v14 }
 0x1f3   : > { %1733 = vmatprep.subr.mxu1 %v1612_v61  ;;  %1844 = vmatprep.subr.mxu0 %v1678_v32 }
 0x1f4   : > { %1734 = vmatpush2.msra.mxu1 %v1611_v27  ;;  %1845 = vmatpush2.msra.mxu0 %v1677_v26 }
 0x1f5   : > { %1735 = vmatprep.subr.mxu1 %v1610_v28  ;;  %1846 = vmatprep.subr.mxu0 %v1676_v46 }
 0x1f6   : > { %1736 = vmatpush2.msra.mxu1 %v1609_v13  ;;  %1847 = vmatpush2.msra.mxu0 %v1675_v22 }
 0x1f7   : > { %1737 = vmatprep.subr.mxu1 %v1608_v49  ;;  %1848 = vmatprep.subr.mxu0 %v1674_v47 }
 0x1f8   : > { %1738 = vmatpush2.msra.mxu1 %v1607_v1  ;;  %1849 = vmatpush2.msra.mxu0 %v1673_v34 }
 0x1f9   : > { %1739 = vmatprep.subr.mxu1 %v1606_v40  ;;  %1850 = vmatprep.subr.mxu0 %v1672_v17 }
 0x1fa   : > { %1740 = vmatpush2.msra.mxu1 %v1605_v63  ;;  %1851 = vmatpush2.msra.mxu0 %v1671_v2 }
 0x1fb   : > { %1741 = vmatprep.subr.mxu1 %v1604_v59  ;;  %1852 = vmatprep.subr.mxu0 %v1670_v54 }
 0x1fc   : > { %1742 = vmatpush2.msra.mxu1 %v1603_v10  ;;  %1853 = vmatpush2.msra.mxu0 %v1669_v7 }
 0x1fd   : > { %1743 = vmatprep.subr.mxu1 %v1602_v44  ;;  %1854 = vmatprep.subr.mxu0 %v1668_v19 }
 0x1fe   : > { %1744 = vmatpush2.msra.mxu1 %v1601_v56  ;;  %1855 = vmatpush2.msra.mxu0 %v1667_v5 }
 0x1ff   : > { %1745 = vmatprep.subr.mxu1 %v1600_v55  ;;  %1856 = vmatprep.subr.mxu0 %v1666_v33 }
 0x200   : > { %1746 = vmatpush2.msra.mxu1 %v1599_v37  ;;  %1857 = vmatpush2.msra.mxu0 %v1665_v15 }
 0x201   : > { %1747 = vmatprep.subr.mxu1 %v1598_v31  ;;  %1858 = vmatprep.subr.mxu0 %v1664_v18 }
 0x202   : > { %1748 = vmatpush2.msra.mxu1 %v1597_v42  ;;  %1859 = vmatpush2.msra.mxu0 %v1663_v38 }
 0x203   : > { %1749 = vmatprep.subr.mxu1 %v1596_v9  ;;  %1860 = vmatprep.subr.mxu0 %v1662_v0 }
 0x204   : > { %1750 = vmatpush2.msra.mxu1 %v1595_v11  ;;  %1861 = vmatpush2.msra.mxu0 %v1661_v51 }
 0x205   : > { %1751 = vmatprep.subr.mxu1 %v1594_v48  ;;  %1862 = vmatprep.subr.mxu0 %v1660_v20 }
 0x206   : > { %1752 = vmatpush2.msra.mxu1 %v1593_v16  ;;  %1863 = vmatpush2.msra.mxu0 %v1659_v57 }
 0x207   : > { %1753 = vmatprep.subr.mxu1 %v1592_v25  ;;  %1864 = vmatprep.subr.mxu0 %v1658_v60 }
 0x208   : > { %1754 = vmatpush2.msra.mxu1 %v1591_v24  ;;  %1865 = vmatpush2.msra.mxu0 %v1657_v30 }
 0x209   : > { %1755 = vmatprep.subr.mxu1 %v1590_v29  ;;  %1866 = vmatprep.subr.mxu0 %v1656_v12 }
 0x20a   : > { %1756 = vmatpush2.msra.mxu1 %v1589_v6  ;;  %1867 = vmatpush2.msra.mxu0 %v1655_v53  ;;  %v4589_v53 = vld [vmem:[%s4583_s27] sm:$0xff] }
 0x20b   : > { %1757 = vmatprep.subr.mxu1 %v1588_v39  ;;  %1868 = vmatprep.subr.mxu0 %v1654_v23 }
 0x20c   : > { %1758 = vmatpush2.msra.mxu1 %v1587_v36  ;;  %1869 = vmatpush2.msra.mxu0 %v1653_v45 }
 0x20d   : > { %1870 = vmatprep.subr.mxu0 %v1652_v21 }
 0x20e   : > { %1871 = vmatpush2.msra.mxu0 %v1651_v35 }
 0x257   : > { %v4525_v58 = vpop.f32.mrf.mxu1  ;;  %v4541_v43 = vpop.f32.mrf.mxu0 }
 0x259   : > { %v4527_v3 = vpop.f32.mrf.mxu1  ;;  %v4547_v32 = vpop.f32.mrf.mxu0 }
 0x25c   : > { %v4529_v4 = vpop.f32.mrf.mxu1 }
 0x25e   : > { %v4531_v50 = vpop.f32.mrf.mxu1 }
 0x261   : > { %v4533_v41 = vpop.f32.mrf.mxu1 }
 0x263   : > { %v4535_v8 = vpop.f32.mrf.mxu1 }
 0x266   : > { %v4537_v52 = vpop.f32.mrf.mxu1 }
 0x268   : > { %v4539_v62 = vpop.f32.mrf.mxu1 }
 0x26b   : > { %v4543_v14 = vpop.f32.mrf.mxu1 }
 0x26d   : > { %v4545_v61 = vpop.f32.mrf.mxu1 }
 0x270   : > { %v4549_v27 = vpop.f32.mrf.mxu0 }
 0x271   : > { %v4551_v26 = vpop.f32.mrf.mxu1 }
 0x272   : > { %v4553_v28 = vpop.f32.mrf.mxu0 }
 0x273   : > { %v4555_v46 = vpop.f32.mrf.mxu1 }
 0x276   : > { %v4557_v13 = vpop.f32.mrf.mxu0 }
 0x277   : > { %v4559_v22 = vpop.f32.mrf.mxu1 }
 0x278   : > { %v4561_v49 = vpop.f32.mrf.mxu0 }
 0x279   : > { %v4563_v47 = vpop.f32.mrf.mxu1 }
 0x27c   : > { %v4565_v1 = vpop.f32.mrf.mxu0 }
 0x27d   : > { %v4567_v34 = vpop.f32.mrf.mxu1 }
 0x27e   : > { %v4571_v17 = vpop.f32.mrf.mxu0 }
 0x27f   : > { %v4569_v40 = vpop.f32.mrf.mxu1 }
 0x283   : > { %v1331_v63 = vpop.f32.mrf.mxu1  ;;  %v2556_v2 = vpop.f32.mrf.mxu0 }
 0x284   : > { %v1483_v59 = vmax.f32 %v1331_v63, 1.0  ;;  %v1488_v54 = vmax.f32 %v2556_v2, 1.0 }
 0x285   : > { %v1333_v10 = vpop.f32.mrf.mxu1  ;;  %v1444_v7 = vpop.f32.mrf.mxu0 }
 0x286   : > { %2579 = vrcp.f32 %v1483_v59  ;;  %v1484_v44 = vmax.f32 %v1333_v10, 1.0  ;;  %v1485_v19 = vmax.f32 %v1444_v7, 1.0  ;;  %v4596_v7 = vld [vmem:[%s4583_s27 + $0x8] sm:$0xff] }
 0x287   : > { %2581 = vrcp.f32 %v1488_v54  ;;  %v1337_v56 = vpop.f32.mrf.mxu1  ;;  %v2559_v5 = vpop.f32.mrf.mxu0 }
 0x288   : > { %2583 = vrcp.f32 %v1484_v44  ;;  %v1486_v55 = vmax.f32 %v1337_v56, 1.0  ;;  %v1494_v9 = vmax.f32 %v2559_v5, 1.0 }
 0x289   : > { %2585 = vrcp.f32 %v1485_v19  ;;  %v1339_v33 = vpop.f32.mrf.mxu1  ;;  %v1454_v37 = vpop.f32.mrf.mxu0 }
 0x28a   : > { %2587 = vrcp.f32 %v1486_v55  ;;  %v1487_v15 = vmax.f32 %v1339_v33, 1.0  ;;  %v1491_v31 = vmax.f32 %v1454_v37, 1.0 }
 0x28b   : > { %v1343_v18 = vpop.f32.mrf.mxu1  ;;  %v2562_v42 = vpop.f32.mrf.mxu0 }
 0x28c   : > { %2589 = vrcp.f32 %v1487_v15  ;;  %v1489_v38 = vmax.f32 %v1343_v18, 1.0  ;;  %v1500_v23 = vmax.f32 %v2562_v42, 1.0 }
 0x28d   : > { %2591 = vrcp.f32 %v1491_v31  ;;  %v1345_v0 = vpop.f32.mrf.mxu1  ;;  %v1464_v51 = vpop.f32.mrf.mxu0  ;;  %v4603_v31 = vld [vmem:[%s4583_s27 + $0x10] sm:$0xff] }
 0x28e   : > { %2593 = vrcp.f32 %v1489_v38  ;;  %v1490_v11 = vmax.f32 %v1345_v0, 1.0  ;;  %v1497_v16 = vmax.f32 %v1464_v51, 1.0 }
 0x28f   : > { %v1349_v48 = vpop.f32.mrf.mxu1  ;;  %v4585_v25 = vpop.f32.mrf.mxu0 }
 0x290   : > { %2595 = vrcp.f32 %v1490_v11  ;;  %v1492_v20 = vmax.f32 %v1349_v48, 1.0 }
 0x291   : > { %2597 = vrcp.f32 %v1494_v9  ;;  %v1351_v57 = vpop.f32.mrf.mxu1  ;;  %v1474_v21 = vpop.f32.mrf.mxu0 }
 0x292   : > { %2599 = vrcp.f32 %v1492_v20  ;;  %v1493_v60 = vmax.f32 %v1351_v57, 1.0  ;;  %v1503_v19 = vmax.f32 %v1474_v21, 1.0  ;;  %v4611_v20 = vld [vmem:[%s4583_s27 + $0x18] sm:$0xff] }
 0x293   : > { %v2580_v24 = vpop.eup %2579  ;;  %v1355_v30 = vpop.f32.mrf.mxu1 }
 0x294   : > { %v2582_v29 = vpop.eup %2581  ;;  %2601 = vrcp.f32 %v1493_v60  ;;  %v1495_v12 = vmax.f32 %v1355_v30, 1.0  ;;  %v1531_v6 = vmul.f32 %v2580_v24, %v4525_v58  ;;  %v4618_v30 = vld [vmem:[%s4583_s27 + $0x20] sm:$0xff] }
 0x295   : > { %v2584_v39 = vpop.eup %2583  ;;  %2603 = vrcp.f32 %v1497_v16  ;;  %v1357_v36 = vpop.f32.mrf.mxu1 }
 0x296   : > { %v2586_v45 = vpop.eup %2585  ;;  %2605 = vrcp.f32 %v1495_v12  ;;  %v1496_v35 = vmax.f32 %v1357_v36, 1.0  ;;  %1759 = vmatprep.mubr.f32.mxu1 %v1531_v6  ;;  %v1532_v63 = vmul.f32 %v2584_v39, %v4527_v3  ;;  %v1536_v3 = vmul.f32 %v2582_v29, %v4541_v43 }
 0x297   : > { %v2588_v2 = vpop.eup %2587  ;;  %v1361_v59 = vpop.f32.mrf.mxu1  ;;  %1760 = vmatmul.mubr.f32.vlgmr.msra.gmra.mxu1 %v4589_v53  ;;  %v1533_v58 = vmul.f32 %v2586_v45, %v4547_v32  ;;  %v1506_v43 = vmax.f32 %v4585_v25, 1.0 }
 0x298   : > { %2607 = vrcp.f32 %v1496_v35  ;;  %v1498_v54 = vmax.f32 %v1361_v59, 1.0  ;;  %v1534_v10 = vmul.f32 %v2588_v2, %v4529_v4  ;;  %v4632_v35 = vld [vmem:[%s4583_s27 + $0x30] sm:$0xff] }
 0x299   : > { %v2590_v44 = vpop.eup %2589  ;;  %2609 = vrcp.f32 %v1500_v23  ;;  %1872 = vmatprep.mubr.f32.mxu0 %v1533_v58  ;;  %v1363_v56 = vpop.f32.mrf.mxu1  ;;  %v4625_v23 = vld [vmem:[%s4583_s27 + $0x28] sm:$0xff]  ;;  %v4639_v58 = vld [vmem:[%s4583_s27 + $0x38] sm:$0xff] }
 0x29a   : > { %v2592_v5 = vpop.eup %2591  ;;  %2611 = vrcp.f32 %v1498_v54  ;;  %v1499_v55 = vmax.f32 %v1363_v56, 1.0  ;;  %1873 = vmatmul.mubr.f32.vlgmr.msra.gmra.mxu0 %v1532_v63  ;;  %1765 = vmatprep.mubr.f32.mxu1 %v1534_v10  ;;  %v1535_v32 = vmul.f32 %v2590_v44, %v4531_v50  ;;  %v1683_v44 = vld [vmem:[%s4725_s6] sm:$0x3] }
 0x29b   : > { %v2594_v33 = vpop.eup %2593  ;;  %1878 = vmatprep.mubr.f32.mxu0 %v1536_v3  ;;  %v1367_v4 = vpop.f32.mrf.mxu1  ;;  %1766 = vmatmul.mubr.f32.gmra.mxu1 %v4596_v7  ;;  %v1539_v38 = vmul.f32 %v2592_v5, %v4553_v28 }
 0x29c   : > { %2613 = vrcp.f32 %v1499_v55  ;;  %v1501_v37 = vmax.f32 %v1367_v4, 1.0  ;;  %v1537_v15 = vmul.f32 %v2594_v33, %v4533_v41 }
 0x29d   : > { %v2596_v18 = vpop.eup %2595  ;;  %2615 = vrcp.f32 %v1503_v19  ;;  %v1369_v42 = vpop.f32.mrf.mxu1 }
 0x29e   : > { %v2598_v50 = vpop.eup %2597  ;;  %2617 = vrcp.f32 %v1501_v37  ;;  %v1502_v9 = vmax.f32 %v1369_v42, 1.0  ;;  %1879 = vmatmul.mubr.f32.gmra.mxu0 %v1535_v32  ;;  %1771 = vmatprep.mubr.f32.mxu1 %v1537_v15  ;;  %v1538_v0 = vmul.f32 %v2596_v18, %v4535_v8 }
 0x29f   : > { %v2600_v11 = vpop.eup %2599  ;;  %1884 = vmatprep.mubr.f32.mxu0 %v1539_v38  ;;  %v1373_v41 = vpop.f32.mrf.mxu1  ;;  %1772 = vmatmul.mubr.f32.gmra.mxu1 %v4603_v31  ;;  %v1542_v57 = vmul.f32 %v2598_v50, %v4549_v27 }
 0x2a0   : > { %2619 = vrcp.f32 %v1502_v9  ;;  %v1504_v51 = vmax.f32 %v1373_v41, 1.0  ;;  %v1540_v48 = vmul.f32 %v2600_v11, %v4537_v52 }
 0x2a1   : > { %v2602_v28 = vpop.eup %2601  ;;  %2621 = vrcp.f32 %v1506_v43  ;;  %v1375_v16 = vpop.f32.mrf.mxu1 }
 0x2a2   : > { %v2604_v25 = vpop.eup %2603  ;;  %2623 = vrcp.f32 %v1504_v51  ;;  %v1505_v8 = vmax.f32 %v1375_v16, 1.0  ;;  %1885 = vmatmul.mubr.f32.gmra.mxu0 %v1538_v0  ;;  %1777 = vmatprep.mubr.f32.mxu1 %v1540_v48  ;;  %v1541_v60 = vmul.f32 %v2602_v28, %v4539_v62 }
 0x2a3   : > { %v2606_v24 = vpop.eup %2605  ;;  %1890 = vmatprep.mubr.f32.mxu0 %v1542_v57  ;;  %1778 = vmatmul.mubr.f32.gmra.mxu1 %v4611_v20  ;;  %v1545_v27 = vmul.f32 %v2604_v25, %v4561_v49 }
 0x2a4   : > { %2625 = vrcp.f32 %v1505_v8  ;;  %v1543_v52 = vmul.f32 %v2606_v24, %v4543_v14 }
 0x2a5   : > { %v2608_v29 = vpop.eup %2607 }
 0x2a6   : > { %v2610_v12 = vpop.eup %2609  ;;  %1891 = vmatmul.mubr.f32.gmra.mxu0 %v1541_v60  ;;  %1783 = vmatprep.mubr.f32.mxu1 %v1543_v52  ;;  %v1544_v6 = vmul.f32 %v2608_v29, %v4545_v61 }
 0x2a7   : > { %v2612_v62 = vpop.eup %2611  ;;  %1896 = vmatprep.mubr.f32.mxu0 %v1545_v27  ;;  %1784 = vmatmul.mubr.f32.gmra.mxu1 %v4618_v30  ;;  %v1548_v36 = vmul.f32 %v2610_v12, %v4557_v13 }
 0x2a8   : > { %v1546_v39 = vmul.f32 %v2612_v62, %v4551_v26 }
 0x2a9   : > { %v2614_v14 = vpop.eup %2613 }
 0x2aa   : > { %v2616_v45 = vpop.eup %2615  ;;  %1897 = vmatmul.mubr.f32.gmra.mxu0 %v1544_v6  ;;  %1789 = vmatprep.mubr.f32.mxu1 %v1546_v39  ;;  %v1547_v49 = vmul.f32 %v2614_v14, %v4555_v46 }
 0x2ab   : > { %v2618_v21 = vpop.eup %2617  ;;  %1902 = vmatprep.mubr.f32.mxu0 %v1548_v36  ;;  %1790 = vmatmul.mubr.f32.gmra.mxu1 %v4625_v23  ;;  %v1551_v63 = vmul.f32 %v2616_v45, %v4571_v17 }
 0x2ac   : > { %v1549_v61 = vmul.f32 %v2618_v21, %v4559_v22 }
 0x2ad   : > { %v2620_v26 = vpop.eup %2619 }
 0x2ae   : > { %v2622_v2 = vpop.eup %2621  ;;  %1903 = vmatmul.mubr.f32.gmra.mxu0 %v1547_v49  ;;  %1795 = vmatprep.mubr.f32.mxu1 %v1549_v61  ;;  %v1550_v13 = vmul.f32 %v2620_v26, %v4563_v47  ;;  %v5087_v47 = vld [vmem:[#allocation2_spill] sm:$0xff] }
 0x2af   : > { %v2624_v59 = vpop.eup %2623  ;;  %1908 = vmatprep.mubr.f32.mxu0 %v1551_v63  ;;  %1796 = vmatmul.mubr.f32.gmra.mxu1 %v4632_v35  ;;  %v1554_v22 = vmul.f32 %v2622_v2, %v4565_v1  ;;  %v1687_v10 = vsub.s32 0, %v5087_v47 }
 0x2b0   : > { %v1552_v46 = vmul.f32 %v2624_v59, %v4567_v34  ;;  %v1691_v34 = vsub.s32 1, %v5087_v47 }
 0x2b1   : > { %v2626_v54 = vpop.eup %2625  ;;  %v4649_v19 = vrot.slane %v1683_v44, %v1687_v10 }
 0x2b2   : > { %1909 = vmatmul.mubr.f32.gmra.mxu0 %v1550_v13  ;;  %1801 = vmatprep.mubr.f32.mxu1 %v1552_v46  ;;  %v1553_v17 = vmul.f32 %v2626_v54, %v4569_v40  ;;  %v4651_v56 = vrot.slane %v1683_v44, %v1691_v34 }
 0x2b3   : > { %1914 = vmatprep.mubr.f32.mxu0 %v1554_v22  ;;  %1802 = vmatmul.mubr.f32.gmra.mxu1 %v4639_v58 }
 0x2b6   : > { %1915 = vmatmul.mubr.f32.gmra.mxu0 %v1553_v17 }
 0x357   : > { %v1761_v1 = vpop.f32.mrf.mxu1 }
 0x358   : > { %v1762_v3 = vadd.f32 %v1761_v1, %v4649_v19 }
 0x359   : > { %v1763_v40 = vpop.f32.mrf.mxu1 }
 0x35a   : > { %v1764_v5 = vadd.f32 %v1763_v40, %v4651_v56  ;;  %v1874_v55 = vpop.f32.mrf.mxu0 }
 0x35b   : > { %v4655_v32 = vadd.f32 %v1874_v55, %v1762_v3  ;;  %v1767_v33 = vpop.f32.mrf.mxu1 }
 0x35c   : > { %v1768_v4 = vadd.f32 %v1767_v33, %v4649_v19  ;;  %v1876_v37 = vpop.f32.mrf.mxu0 }
 0x35d   : > { %v1877_v15 = vadd.f32 %v1876_v37, %v1764_v5  ;;  %v1769_v18 = vpop.f32.mrf.mxu1 }
 0x35e   : > { %v1770_v43 = vadd.f32 %v1769_v18, %v4651_v56  ;;  %v1880_v42 = vpop.f32.mrf.mxu0 }
 0x35f   : > { %v2332_v38 = vmul.f32 -1.442695, %v1877_v15  ;;  %v4659_v50 = vadd.f32 %v1880_v42, %v1768_v4  ;;  %v1773_v9 = vpop.f32.mrf.mxu1 }
 0x360   : > { %v1774_v0 = vadd.f32 %v1773_v9, %v4649_v19  ;;  %v1882_v11 = vpop.f32.mrf.mxu0 }
 0x361   : > { %2627 = vpow2.f32 %v2332_v38  ;;  %v1883_v41 = vadd.f32 %v1882_v11, %v1770_v43  ;;  %v1775_v51 = vpop.f32.mrf.mxu1 }
 0x362   : > { %v1776_v48 = vadd.f32 %v1775_v51, %v4651_v56  ;;  %v1886_v28 = vpop.f32.mrf.mxu0 }
 0x363   : > { %v2333_v16 = vmul.f32 -1.442695, %v1883_v41  ;;  %v4663_v57 = vadd.f32 %v1886_v28, %v1774_v0  ;;  %v1779_v25 = vpop.f32.mrf.mxu1 }
 0x364   : > { %v1780_v8 = vadd.f32 %v1779_v25, %v4649_v19  ;;  %v1888_v60 = vpop.f32.mrf.mxu0 }
 0x365   : > { %2629 = vpow2.f32 %v2333_v16  ;;  %v1889_v24 = vadd.f32 %v1888_v60, %v1776_v48  ;;  %v1781_v52 = vpop.f32.mrf.mxu1 }
 0x366   : > { %v1782_v29 = vadd.f32 %v1781_v52, %v4651_v56  ;;  %v1892_v27 = vpop.f32.mrf.mxu0 }
 0x367   : > { %v2334_v12 = vmul.f32 -1.442695, %v1889_v24  ;;  %v4667_v6 = vadd.f32 %v1892_v27, %v1780_v8  ;;  %v1785_v62 = vpop.f32.mrf.mxu1 }
 0x368   : > { %v1786_v39 = vadd.f32 %v1785_v62, %v4649_v19  ;;  %v1894_v14 = vpop.f32.mrf.mxu0 }
 0x369   : > { %2631 = vpow2.f32 %v2334_v12  ;;  %v1895_v36 = vadd.f32 %v1894_v14, %v1782_v29  ;;  %v1787_v45 = vpop.f32.mrf.mxu1 }
 0x36a   : > { %v1788_v49 = vadd.f32 %v1787_v45, %v4651_v56  ;;  %v1898_v21 = vpop.f32.mrf.mxu0 }
 0x36b   : > { %v2335_v61 = vmul.f32 -1.442695, %v1895_v36  ;;  %v4671_v26 = vadd.f32 %v1898_v21, %v1786_v39  ;;  %v1791_v63 = vpop.f32.mrf.mxu1 }
 0x36c   : > { %v1792_v2 = vadd.f32 %v1791_v63, %v4649_v19  ;;  %v1900_v13 = vpop.f32.mrf.mxu0 }
 0x36d   : > { %2633 = vpow2.f32 %v2335_v61  ;;  %v1901_v59 = vadd.f32 %v1900_v13, %v1788_v49  ;;  %v1793_v46 = vpop.f32.mrf.mxu1 }
 0x36e   : > { %v2628_v54 = vpop.eup %2627  ;;  %v1794_v22 = vadd.f32 %v1793_v46, %v4651_v56  ;;  %v1904_v17 = vpop.f32.mrf.mxu0 }
 0x36f   : > { %v1945_v47 = vadd.f32 1.0, %v2628_v54  ;;  %v2336_v10 = vmul.f32 -1.442695, %v1901_v59  ;;  %v4675_v44 = vadd.f32 %v1904_v17, %v1792_v2  ;;  %v1797_v34 = vpop.f32.mrf.mxu1 }
 0x370   : > { %v1798_v1 = vadd.f32 %v1797_v34, %v4649_v19  ;;  %v1906_v3 = vpop.f32.mrf.mxu0 }
 0x371   : > { %2635 = vrcp.f32 %v1945_v47  ;;  %v1907_v40 = vadd.f32 %v1906_v3, %v1794_v22  ;;  %v1799_v5 = vpop.f32.mrf.mxu1 }
 0x372   : > { %v2630_v55 = vpop.eup %2629  ;;  %2637 = vpow2.f32 %v2336_v10  ;;  %v1800_v33 = vadd.f32 %v1799_v5, %v4651_v56  ;;  %v1910_v4 = vpop.f32.mrf.mxu0 }
 0x373   : > { %v1946_v37 = vadd.f32 1.0, %v2630_v55  ;;  %v2337_v15 = vmul.f32 -1.442695, %v1907_v40  ;;  %v4679_v18 = vadd.f32 %v1910_v4, %v1798_v1  ;;  %v1803_v43 = vpop.f32.mrf.mxu1 }
 0x374   : > { %v1804_v42 = vadd.f32 %v1803_v43, %v4649_v19  ;;  %v1912_v38 = vpop.f32.mrf.mxu0 }
 0x375   : > { %2639 = vrcp.f32 %v1946_v37  ;;  %v1913_v9 = vadd.f32 %v1912_v38, %v1800_v33  ;;  %v1805_v0 = vpop.f32.mrf.mxu1 }
 0x376   : > { %v2632_v11 = vpop.eup %2631  ;;  %2641 = vpow2.f32 %v2337_v15  ;;  %v1806_v41 = vadd.f32 %v1805_v0, %v4651_v56  ;;  %v1916_v51 = vpop.f32.mrf.mxu0 }
 0x377   : > { %v1947_v48 = vadd.f32 1.0, %v2632_v11  ;;  %v2338_v28 = vmul.f32 -1.442695, %v1913_v9  ;;  %v4683_v16 = vadd.f32 %v1916_v51, %v1804_v42 }
 0x378   : > { %v1918_v25 = vpop.f32.mrf.mxu0 }
 0x379   : > { %2643 = vrcp.f32 %v1947_v48  ;;  %v1919_v8 = vadd.f32 %v1918_v25, %v1806_v41 }
 0x37a   : > { %v2634_v60 = vpop.eup %2633  ;;  %2645 = vpow2.f32 %v2338_v28 }
 0x37b   : > { %v1948_v24 = vadd.f32 1.0, %v2634_v60  ;;  %v2339_v19 = vmul.f32 -1.442695, %v1919_v8 }
 0x37d   : > { %2647 = vrcp.f32 %v1948_v24 }
 0x37e   : > { %v2636_v52 = vpop.eup %2635  ;;  %2649 = vpow2.f32 %v2339_v19 }
 0x37f   : > { %v2638_v29 = vpop.eup %2637  ;;  %1979 = vperm.xlu0 %2577, %v2636_v52   ;;  %v2025_v12 = vsub.f32 1.0, %v2636_v52 }
 0x380   : > { %v1949_v27 = vadd.f32 1.0, %v2638_v29 }
 0x382   : > { %v2640_v56 = vpop.eup %2639  ;;  %2651 = vrcp.f32 %v1949_v27 }
 0x383   : > { %v2642_v62 = vpop.eup %2641  ;;  %1984 = vperm.xlu1 %2578, %v2640_v56   ;;  %2035 = vperm.xlu0 %2577, %v2025_v12   ;;  %v2026_v14 = vsub.f32 1.0, %v2640_v56 }
 0x384   : > { %v1950_v39 = vadd.f32 1.0, %v2642_v62 }
 0x386   : > { %v2644_v36 = vpop.eup %2643  ;;  %2653 = vrcp.f32 %v1950_v39 }
 0x387   : > { %v2646_v45 = vpop.eup %2645  ;;  %2040 = vperm.xlu1 %2578, %v2026_v14   ;;  %1989 = vperm.xlu0 %2577, %v2644_v36   ;;  %v2027_v21 = vsub.f32 1.0, %v2644_v36 }
 0x388   : > { %v1951_v49 = vadd.f32 1.0, %v2646_v45 }
 0x38a   : > { %v2648_v61 = vpop.eup %2647  ;;  %2655 = vrcp.f32 %v1951_v49 }
 0x38b   : > { %v2650_v63 = vpop.eup %2649  ;;  %1994 = vperm.xlu1 %2578, %v2648_v61   ;;  %2045 = vperm.xlu0 %2577, %v2027_v21   ;;  %v2028_v13 = vsub.f32 1.0, %v2648_v61 }
 0x38c   : > { %v1952_v2 = vadd.f32 1.0, %v2650_v63 }
 0x38e   : > { %2657 = vrcp.f32 %v1952_v2 }
 0x38f   : > { %v2652_v59 = vpop.eup %2651  ;;  %2050 = vperm.xlu1 %2578, %v2028_v13   ;;  %2659 = vtanh.f32 %v4655_v32 }
 0x390   : > { %1999 = vperm.xlu0 %2577, %v2652_v59   ;;  %v2029_v46 = vsub.f32 1.0, %v2652_v59  ;;  %2661 = vtanh.f32 %v4659_v50 }
 0x391   : > { %2663 = vtanh.f32 %v4663_v57 }
 0x392   : > { %2665 = vtanh.f32 %v4667_v6 }
 0x393   : > { %v2654_v54 = vpop.eup %2653  ;;  %2667 = vtanh.f32 %v4671_v26 }
 0x394   : > { %2004 = vperm.xlu1 %2578, %v2654_v54   ;;  %2055 = vperm.xlu0 %2577, %v2029_v46   ;;  %v2030_v22 = vsub.f32 1.0, %v2654_v54  ;;  %2669 = vtanh.f32 %v4675_v44 }
 0x395   : > { %2671 = vtanh.f32 %v4679_v18 }
 0x396   : > { %2673 = vtanh.f32 %v4683_v16 }
 0x397   : > { %v2656_v17 = vpop.eup %2655 }
 0x398   : > { %2060 = vperm.xlu1 %2578, %v2030_v22   ;;  %2009 = vperm.xlu0 %2577, %v2656_v17   ;;  %v2031_v47 = vsub.f32 1.0, %v2656_v17 }
 0x39b   : > { %v2658_v10 = vpop.eup %2657 }
 0x39c   : > { %2014 = vperm.xlu1 %2578, %v2658_v10   ;;  %2065 = vperm.xlu0 %2577, %v2031_v47   ;;  %v2032_v34 = vsub.f32 1.0, %v2658_v10  ;;  %v2660_v3 = vpop.eup %2659 }
 0x39d   : > { %v2662_v50 = vpop.eup %2661 }
 0x39e   : > { %v2664_v15 = vpop.eup %2663 }
 0x39f   : > { %v2666_v26 = vpop.eup %2665 }
 0x3a0   : > { %2070 = vperm.xlu1 %2578, %v2032_v34   ;;  %v2668_v44 = vpop.eup %2667 }
 0x3a1   : > { %v2670_v18 = vpop.eup %2669 }
 0x3a2   : > { %v2672_v16 = vpop.eup %2671 }
 0x3fa   : > { %v1980_v1 = vpop.permute.xlu0 %1979 }
 0x3fb   : > { %v2017_v55 = vmul.f32 %v2660_v3, %v1980_v1 }
 0x3fe   : > { %v1985_v40 = vpop.permute.xlu1 %1984  ;;  %v2036_v5 = vpop.permute.xlu0 %2035 }
 0x3ff   : > { %v2073_v33 = vmul.f32 %v2036_v5, %v4589_v53  ;;  %v2018_v4 = vmul.f32 %v2662_v50, %v1985_v40 }
 0x401   : > { %v2081_v32 = vadd.f32 %v2073_v33, %v2017_v55 }
 0x402   : > { %v2041_v57 = vpop.permute.xlu1 %2040  ;;  %v1990_v6 = vpop.permute.xlu0 %1989 }
 0x403   : > { %2089 = vst [vmem:[%s4695_s9] sm:$0xff] %v2081_v32  ;;  %v2074_v37 = vmul.f32 %v2041_v57, %v4596_v7  ;;  %v2019_v38 = vmul.f32 %v2664_v15, %v1990_v6 }
 0x405   : > { %v2082_v53 = vadd.f32 %v2074_v37, %v2018_v4 }
 0x406   : > { %v1995_v43 = vpop.permute.xlu1 %1994  ;;  %v2046_v42 = vpop.permute.xlu0 %2045 }
 0x407   : > { %2090 = vst [vmem:[%s4695_s9 + $0x8] sm:$0xff] %v2082_v53  ;;  %v2075_v9 = vmul.f32 %v2046_v42, %v4603_v31  ;;  %v2020_v41 = vmul.f32 %v2666_v26, %v1995_v43 }
 0x409   : > { %v2083_v0 = vadd.f32 %v2075_v9, %v2019_v38 }
 0x40a   : > { %v2051_v11 = vpop.permute.xlu1 %2050 }
 0x40b   : > { %2091 = vst [vmem:[%s4695_s9 + $0x10] sm:$0xff] %v2083_v0  ;;  %v2076_v7 = vmul.f32 %v2051_v11, %v4611_v20  ;;  %v2000_v51 = vpop.permute.xlu0 %1999 }
 0x40c   : > { %v2021_v31 = vmul.f32 %v2668_v44, %v2000_v51 }
 0x40d   : > { %v2084_v48 = vadd.f32 %v2076_v7, %v2020_v41 }
 0x40f   : > { %2092 = vst [vmem:[%s4695_s9 + $0x18] sm:$0xff] %v2084_v48  ;;  %v2005_v28 = vpop.permute.xlu1 %2004  ;;  %v2056_v25 = vpop.permute.xlu0 %2055 }
 0x410   : > { %v2077_v8 = vmul.f32 %v2056_v25, %v4618_v30  ;;  %v2022_v52 = vmul.f32 %v2670_v18, %v2005_v28  ;;  %v2674_v30 = vpop.eup %2673 }
 0x412   : > { %v2085_v60 = vadd.f32 %v2077_v8, %v2021_v31 }
 0x413   : > { %v2061_v24 = vpop.permute.xlu1 %2060  ;;  %v2010_v19 = vpop.permute.xlu0 %2009 }
 0x414   : > { %2093 = vst [vmem:[%s4695_s9 + $0x20] sm:$0xff] %v2085_v60  ;;  %v2078_v20 = vmul.f32 %v2061_v24, %v4625_v23  ;;  %v2023_v56 = vmul.f32 %v2672_v16, %v2010_v19 }
 0x416   : > { %v2086_v29 = vadd.f32 %v2078_v20, %v2022_v52 }
 0x417   : > { %v2015_v27 = vpop.permute.xlu1 %2014  ;;  %v2066_v12 = vpop.permute.xlu0 %2065 }
 0x418   : > { %2094 = vst [vmem:[%s4695_s9 + $0x28] sm:$0xff] %v2086_v29  ;;  %v2079_v62 = vmul.f32 %v2066_v12, %v4632_v35  ;;  %v2024_v36 = vmul.f32 %v2674_v30, %v2015_v27 }
 0x41a   : > { %v2087_v39 = vadd.f32 %v2079_v62, %v2023_v56 }
 0x41b   : > { %v2071_v14 = vpop.permute.xlu1 %2070 }
 0x41c   : > { %2095 = vst [vmem:[%s4695_s9 + $0x30] sm:$0xff] %v2087_v39  ;;  %v2080_v45 = vmul.f32 %v2071_v14, %v4639_v58 }
 0x41e   : > { %v2088_v49 = vadd.f32 %v2080_v45, %v2024_v36 }
 0x420   : > { %2096 = vst [vmem:[%s4695_s9 + $0x38] sm:$0xff] %v2088_v49 }
 0x421 PF: > { %s17_s24 = sadd.s32 1, %s2681_s24  }
 0x422   : > { %p14_p4 = scmp.ge.s32.totalorder %s17_s24, 4  }
 0x424   :  { %16 = sbr.rel (!%p14_p4) target bundleno = 1 (0x1), region = 78 }

</bundles_post_ra>
